<compile_context>
chip_gen: v7x
topology: tpu7x:2x2x1
jax: 0.10.0
libtpu: 0.0.40
codegen_flags: <defaults>
</compile_context>

<pallas_src>
import functools

import jax
import jax.numpy as jnp
from jax.experimental import pallas as pl
from jax.experimental.pallas import tpu as pltpu


# ---------------------------------------------------------------------------
# helpers
# ---------------------------------------------------------------------------

_VMEM_BUDGET = 40 * 1024 * 1024        # working-set target; safe on v7x (64 MiB VMEM)


def _round_up(x, m):
    return ((x + m - 1) // m) * m


def _cdiv(a, b):
    return (a + b - 1) // b


def _sublane(dtype):
    # sub-32-bit dtypes pack along sublanes (bf16 vreg tile is (16,128), int8 (32,128))
    return 8 * max(1, 4 // jnp.dtype(dtype).itemsize)


def _pick_row_tile(rows, per_row_bytes, fixed_bytes, *, dtype, min_tiles=1,
                   budget=_VMEM_BUDGET):
    """Largest row tile (multiple of the dtype's sublane pack, <=1024) such that
    fixed_bytes + per_row_bytes * TM fits the VMEM working-set budget.  min_tiles=2
    keeps >=2 steps on the parallel grid axis so both v7x TensorCores get work."""
    sub = _sublane(dtype)
    cap = 1024
    if min_tiles > 1 and rows > sub:
        cap = min(cap, _round_up(_cdiv(rows, min_tiles), sub))
    tm = min(cap, _round_up(rows, sub))
    while tm > sub and fixed_bytes + per_row_bytes * tm > budget:
        tm = max(sub, _round_up(tm // 2, sub))
    return tm


def _vmem_limit(est_bytes):
    # raise the scoped-VMEM limit enough for our working set; stay <= 56 MiB (v7x safe)
    return int(min(56 * 2**20, max(32 * 2**20, int(1.5 * est_bytes) + (2 << 20))))


def _gelu(x):
    # TODO(synk): PyTorch nn.GELU() defaults to the exact (erf) form; the tanh
    # approximation is used here (and in the in-script reference) for guaranteed
    # Mosaic lowering.
    return jax.nn.gelu(x, approximate=True)


# ---------------------------------------------------------------------------
# Pallas kernels
# ---------------------------------------------------------------------------

def _linear_kernel(x_ref, w_ref, b_ref, o_ref):
    # native-dtype operands straight into the MXU; f32 accumulation only.
    acc = jnp.dot(x_ref[...], w_ref[...], preferred_element_type=jnp.float32)
    o_ref[...] = (acc + b_ref[...]).astype(o_ref.dtype)


def _layernorm_kernel(x_ref, g_ref, b_ref, o_ref, *, eps):
    x = x_ref[...].astype(jnp.float32)          # LN statistics in f32 (VPU path)
    mu = jnp.mean(x, axis=-1, keepdims=True)
    var = jnp.mean(jnp.square(x - mu), axis=-1, keepdims=True)
    y = (x - mu) * jax.lax.rsqrt(var + eps)
    o_ref[...] = (y * g_ref[...] + b_ref[...]).astype(o_ref.dtype)


def _moe_fused_kernel(idx_ref, wgt_ref, x_ref, res_ref,
                      ew1_ref, eb1_ref, ew2_ref, eb2_ref,
                      sw1_ref, sb1_ref, sw2_ref, sb2_ref,
                      o_ref, acc_ref):
    """grid = (B, S-tiles, top_k).  Routed experts accumulate over the ("arbitrary")
    top_k axis into an f32 VMEM scratch; the shared-experts MLP and the residual add
    are fused into the k == last epilogue so the MoE path writes one (B,S,D) output."""
    b = pl.program_id(0)
    k = pl.program_id(2)

    @pl.when(k == 0)
    def _():
        acc_ref[...] = jnp.zeros_like(acc_ref)

    x = x_ref[...]
    gate_w = wgt_ref[b, k]                      # scalar gate weight from SMEM
    h = jnp.dot(x, ew1_ref[...], preferred_element_type=jnp.float32) + eb1_ref[...]
    h = _gelu(h)
    y = jnp.dot(h.astype(x.dtype), ew2_ref[...],
                preferred_element_type=jnp.float32) + eb2_ref[...]
    acc_ref[...] += gate_w * y

    @pl.when(k == pl.num_programs(2) - 1)
    def _():
        hs = jnp.dot(x, sw1_ref[...], preferred_element_type=jnp.float32) + sb1_ref[...]
        hs = _gelu(hs)
        shared = jnp.dot(hs.astype(x.dtype), sw2_ref[...],
                         preferred_element_type=jnp.float32) + sb2_ref[...]
        o_ref[...] = (acc_ref[...] + shared
                      + res_ref[...].astype(jnp.float32)).astype(o_ref.dtype)


# ---------------------------------------------------------------------------
# pallas_call wrappers
# ---------------------------------------------------------------------------

def pallas_linear(x, w, b2d):
    """(M,K)@(K,N)+b, row-tiled ("parallel").  K and N are taken at full extent (no
    per-call padding); rows padded only up to the chosen tile multiple."""
    M, K = x.shape
    N = w.shape[1]
    isz = x.dtype.itemsize
    per_row = 2 * isz * (K + N) + 4 * N             # dbl-buffered x/out tiles + f32 acc
    fixed = 2 * isz * (K * N + N)                   # dbl-buffered weight + bias
    TM = _pick_row_tile(M, per_row, fixed, dtype=x.dtype, min_tiles=2)
    Mp = _round_up(M, TM)
    xp = x if Mp == M else jnp.pad(x, ((0, Mp - M), (0, 0)))
    est = fixed + per_row * TM
    cost = pl.CostEstimate(flops=2 * Mp * K * N, transcendentals=0,
                           bytes_accessed=isz * (Mp * K + K * N + N + Mp * N))
    out = pl.pallas_call(
        _linear_kernel,
        out_shape=jax.ShapeDtypeStruct((Mp, N), x.dtype),
        grid=(Mp // TM,),
        in_specs=[
            pl.BlockSpec((TM, K), lambda i: (i, 0)),
            pl.BlockSpec((K, N), lambda i: (0, 0)),
            pl.BlockSpec((1, N), lambda i: (0, 0)),
        ],
        out_specs=pl.BlockSpec((TM, N), lambda i: (i, 0)),
        compiler_params=pltpu.CompilerParams(
            dimension_semantics=("parallel",), vmem_limit_bytes=_vmem_limit(est)),
        cost_estimate=cost,
    )(xp, w, b2d)
    return out if Mp == M else out[:M]


def pallas_layer_norm(x, gamma2d, beta2d, eps=1e-5):
    M, D = x.shape
    isz = x.dtype.itemsize
    per_row = 4 * isz * D + 4 * D
    fixed = 4 * isz * D
    TM = _pick_row_tile(M, per_row, fixed, dtype=x.dtype, min_tiles=2)
    Mp = _round_up(M, TM)
    xp = x if Mp == M else jnp.pad(x, ((0, Mp - M), (0, 0)))
    out = pl.pallas_call(
        functools.partial(_layernorm_kernel, eps=eps),
        out_shape=jax.ShapeDtypeStruct((Mp, D), x.dtype),
        grid=(Mp // TM,),
        in_specs=[
            pl.BlockSpec((TM, D), lambda i: (i, 0)),
            pl.BlockSpec((1, D), lambda i: (0, 0)),
            pl.BlockSpec((1, D), lambda i: (0, 0)),
        ],
        out_specs=pl.BlockSpec((TM, D), lambda i: (i, 0)),
        compiler_params=pltpu.CompilerParams(dimension_semantics=("parallel",)),
    )(xp, gamma2d, beta2d)
    return out if Mp == M else out[:M]


def pallas_moe_fused(x, residual, ew1, eb1, ew2, eb2, sw1, sb1, sw2, sb2,
                     topk_idx, topk_w):
    """out[b] = residual[b] + SharedMLP(x[b]) + sum_k topk_w[b,k]*MLP_{topk_idx[b,k]}(x[b]).

    Scalar prefetch (P2) gathers the selected expert's (D,Hp)/(Hp,D) weight blocks via
    the index_map; top_k is an "arbitrary" accumulation axis with an f32 VMEM scratch
    (P3); batch / seq-tile axes are "parallel".  TS is the largest tile the VMEM budget
    allows (ideally Sp//TS == 1) so each selected expert's weights are streamed from
    HBM only B*top_k times; shared-expert weights have a constant block index so they
    are DMA'd once and stay resident."""
    B, S, D = x.shape
    Hp = ew1.shape[2]
    SHp = sw1.shape[1]
    top_k = topk_idx.shape[1]
    isz = x.dtype.itemsize

    # full VMEM working set: dbl-buffered x/res/out tiles + f32 scratch + intermediates
    per_row = 6 * isz * D + 4 * D + 4 * (Hp + SHp + 2 * D)
    # dbl-buffered routed expert blocks + resident shared-expert blocks
    fixed = (2 * isz * (D * Hp + Hp + Hp * D + D)
             + 2 * isz * (D * SHp + SHp + SHp * D + D))
    min_tiles = 2 if B == 1 else 1          # batch axis already feeds both v7x TCs
    TS = _pick_row_tile(S, per_row, fixed, dtype=x.dtype, min_tiles=min_tiles)
    Sp = _round_up(S, TS)
    n_stile = Sp // TS
    if Sp != S:
        x = jnp.pad(x, ((0, 0), (0, Sp - S), (0, 0)))
        residual = jnp.pad(residual, ((0, 0), (0, Sp - S), (0, 0)))

    est = fixed + per_row * TS
    cost = pl.CostEstimate(
        flops=int(4 * B * Sp * D * (top_k * Hp + SHp)),
        transcendentals=int(B * Sp * (top_k * Hp + SHp)),
        bytes_accessed=int(isz * (3 * B * Sp * D
                                  + B * top_k * n_stile * (D * Hp + Hp + Hp * D + D)
                                  + (D * SHp + SHp + SHp * D + D))))

    grid_spec = pltpu.PrefetchScalarGridSpec(
        num_scalar_prefetch=2,
        grid=(B, n_stile, top_k),
        in_specs=[
            pl.BlockSpec((None, TS, D), lambda b, s, k, idx, wgt: (b, s, 0)),   # x (xn2)
            pl.BlockSpec((None, TS, D), lambda b, s, k, idx, wgt: (b, s, 0)),   # residual
            pl.BlockSpec((None, D, Hp), lambda b, s, k, idx, wgt: (idx[b, k], 0, 0)),
            pl.BlockSpec((None, 1, Hp), lambda b, s, k, idx, wgt: (idx[b, k], 0, 0)),
            pl.BlockSpec((None, Hp, D), lambda b, s, k, idx, wgt: (idx[b, k], 0, 0)),
            pl.BlockSpec((None, 1, D), lambda b, s, k, idx, wgt: (idx[b, k], 0, 0)),
            pl.BlockSpec((D, SHp), lambda b, s, k, idx, wgt: (0, 0)),           # shared
            pl.BlockSpec((1, SHp), lambda b, s, k, idx, wgt: (0, 0)),
            pl.BlockSpec((SHp, D), lambda b, s, k, idx, wgt: (0, 0)),
            pl.BlockSpec((1, D), lambda b, s, k, idx, wgt: (0, 0)),
        ],
        out_specs=pl.BlockSpec((None, TS, D), lambda b, s, k, idx, wgt: (b, s, 0)),
        scratch_shapes=[pltpu.VMEM((TS, D), jnp.float32)],
    )
    out = pl.pallas_call(
        _moe_fused_kernel,
        out_shape=jax.ShapeDtypeStruct((B, Sp, D), x.dtype),
        grid_spec=grid_spec,
        compiler_params=pltpu.CompilerParams(
            dimension_semantics=("parallel", "parallel", "arbitrary"),
            vmem_limit_bytes=_vmem_limit(est)),
        cost_estimate=cost,
    )(topk_idx.astype(jnp.int32), topk_w.astype(jnp.float32),
      x, residual, ew1, eb1, ew2, eb2, sw1, sb1, sw2, sb2)
    return out if Sp == S else out[:, :S]


# ---------------------------------------------------------------------------
# one-time parameter prep (outside the per-step jit)
# ---------------------------------------------------------------------------

def prepare_params(p):
    """Pad only the expert / shared HIDDEN dims to 128 multiples (lane-dense MXU
    operands; a no-op at realistic sizes) and reshape biases to (1, N) rows.  Done once,
    so no per-forward HBM pad/slice passes.  Activation dims (D, 3D, E) stay unpadded --
    the kernels take them at full block extent."""
    E, D, H = p["e_w1"].shape
    SH = p["s_w1"].shape[1]
    Hp, SHp = _round_up(H, 128), _round_up(SH, 128)
    out = dict(p)
    out["bqkv"] = p["bqkv"].reshape(1, -1)
    out["bproj"] = p["bproj"].reshape(1, -1)
    out["ln1_g"] = p["ln1_g"].reshape(1, D)
    out["ln1_b"] = p["ln1_b"].reshape(1, D)
    out["ln2_g"] = p["ln2_g"].reshape(1, D)
    out["ln2_b"] = p["ln2_b"].reshape(1, D)
    out["e_w1"] = jnp.pad(p["e_w1"], ((0, 0), (0, 0), (0, Hp - H)))
    out["e_b1"] = jnp.pad(p["e_b1"], ((0, 0), (0, Hp - H))).reshape(E, 1, Hp)
    out["e_w2"] = jnp.pad(p["e_w2"], ((0, 0), (0, Hp - H), (0, 0)))
    out["e_b2"] = p["e_b2"].reshape(E, 1, D)
    out["s_w1"] = jnp.pad(p["s_w1"], ((0, 0), (0, SHp - SH)))
    out["s_b1"] = jnp.pad(p["s_b1"], (0, SHp - SH)).reshape(1, SHp)
    out["s_w2"] = jnp.pad(p["s_w2"], ((0, SHp - SH), (0, 0)))
    out["s_b2"] = p["s_b2"].reshape(1, D)
    return out


# ---------------------------------------------------------------------------
# MoeBlock forward (inference)
# ---------------------------------------------------------------------------

def _attention(x, params, num_heads):
    # TODO(synk): the `Attention` class referenced by attention_type='Attention' is not
    # included in the spec; a standard timm-style MHSA (qkv_bias=False) is assumed.
    # qkv / proj run on the Pallas linear kernel; the tiny softmax(QK^T)V core
    # (head_dim = D/num_heads, here 8) is left to XLA.
    B, S, D = x.shape
    hd = D // num_heads
    qkv = pallas_linear(x.reshape(B * S, D), params["wqkv"], params["bqkv"])
    qkv = qkv.reshape(B, S, 3, num_heads, hd)
    q, k, v = jnp.moveaxis(qkv, 2, 0)
    q, k, v = (jnp.transpose(t, (0, 2, 1, 3)) for t in (q, k, v))
    attn = jax.nn.softmax(jnp.einsum("bhqd,bhkd->bhqk", q, k) * (hd ** -0.5), axis=-1)
    out = jnp.einsum("bhqk,bhkd->bhqd", attn, v)
    out = jnp.transpose(out, (0, 2, 1, 3)).reshape(B * S, D)
    out = pallas_linear(out, params["wproj"], params["bproj"])
    return out.reshape(B, S, D)


def moe_block_forward(x, params, *, num_heads, top_k):
    """Inference forward of MoeBlock (ls1/ls2 = Identity since init_values=None;
    aux losses are training-only and returned as 0)."""
    B, S, D = x.shape

    xn1 = pallas_layer_norm(x.reshape(B * S, D),
                            params["ln1_g"], params["ln1_b"]).reshape(B, S, D)
    x = x + _attention(xn1, params, num_heads)

    residual = x
    xn2 = pallas_layer_norm(x.reshape(B * S, D),
                            params["ln2_g"], params["ln2_b"]).reshape(B, S, D)

    # MoEGate (inference path): the router MLP on the (B,D) sequence mean is tiny, so
    # it runs in plain XLA -- a pallas_call here is pure fixed overhead on the serial
    # critical path before expert routing.
    seq_repr = jnp.mean(xn2, axis=1)
    logits = (_gelu(seq_repr @ params["r_w1"] + params["r_b1"])
              @ params["r_w2"] + params["r_b2"])
    probs = jax.nn.softmax(logits, axis=-1)
    topk_w, topk_idx = jax.lax.top_k(probs, top_k)
    topk_w = jax.nn.softmax(topk_w, axis=-1)          # norm_topk_prob renormalisation
    aux_loss = jnp.zeros((), x.dtype)
    # TODO(synk): training-only paths (gaussian gate noise, load-balancing / DAMEX /
    # load-importance aux losses, AddAuxiliaryLoss backward) are not forward-pass math.

    # routed experts + shared experts + residual, fused into a single kernel.
    y = pallas_moe_fused(xn2, residual,
                         params["e_w1"], params["e_b1"], params["e_w2"], params["e_b2"],
                         params["s_w1"], params["s_b1"], params["s_w2"], params["s_b2"],
                         topk_idx, topk_w)
    return y, aux_loss


# ---------------------------------------------------------------------------
# pure-JAX reference (uses the raw, unpadded parameters)
# ---------------------------------------------------------------------------

def reference_forward(x, params, *, num_heads, top_k):
    def ln(v, g, b, eps=1e-5):
        mu = v.mean(-1, keepdims=True)
        var = ((v - mu) ** 2).mean(-1, keepdims=True)
        return (v - mu) * jax.lax.rsqrt(var + eps) * g + b

    def mlp(v, w1, b1, w2, b2):
        return _gelu(v @ w1 + b1) @ w2 + b2

    B, S, D = x.shape
    hd = D // num_heads
    xn1 = ln(x, params["ln1_g"], params["ln1_b"])
    qkv = (xn1 @ params["wqkv"] + params["bqkv"]).reshape(B, S, 3, num_heads, hd)
    q, k, v = jnp.moveaxis(qkv, 2, 0)
    q, k, v = (jnp.transpose(t, (0, 2, 1, 3)) for t in (q, k, v))
    attn = jax.nn.softmax(jnp.einsum("bhqd,bhkd->bhqk", q, k) * (hd ** -0.5), axis=-1)
    ao = jnp.transpose(jnp.einsum("bhqk,bhkd->bhqd", attn, v),
                       (0, 2, 1, 3)).reshape(B, S, D)
    x = x + (ao @ params["wproj"] + params["bproj"])

    residual = x
    xn2 = ln(x, params["ln2_g"], params["ln2_b"])
    seq_repr = xn2.mean(axis=1)
    logits = mlp(seq_repr, params["r_w1"], params["r_b1"], params["r_w2"], params["r_b2"])
    probs = jax.nn.softmax(logits, axis=-1)
    topk_w, topk_idx = jax.lax.top_k(probs, top_k)
    topk_w = jax.nn.softmax(topk_w, axis=-1)

    E = params["e_w1"].shape[0]
    comb = jnp.sum(jax.nn.one_hot(topk_idx, E, dtype=x.dtype) * topk_w[..., None], axis=1)
    expert_out = jax.vmap(lambda w1, b1, w2, b2: mlp(xn2, w1, b1, w2, b2))(
        params["e_w1"], params["e_b1"], params["e_w2"], params["e_b2"])     # (E,B,S,D)
    y = jnp.einsum("ebsd,be->bsd", expert_out, comb)
    y = y + mlp(xn2, params["s_w1"], params["s_b1"], params["s_w2"], params["s_b2"])
    return residual + y, jnp.zeros((), x.dtype)


# ---------------------------------------------------------------------------
# parameters + test
# ---------------------------------------------------------------------------

def make_params(key, *, dim, n_routed_experts, mlp_ratio, n_shared_experts):
    hidden = int(dim * mlp_ratio)
    shared_hidden = int(dim * mlp_ratio * n_shared_experts)
    ks = jax.random.split(key, 20)
    it = iter(range(20))

    def nrm(k, shape, scale=0.1):
        return jax.random.normal(k, shape, dtype=jnp.float32) * scale

    return {
        "ln1_g": 1.0 + nrm(ks[next(it)], (dim,), 0.05),
        "ln1_b": nrm(ks[next(it)], (dim,), 0.05),
        "ln2_g": 1.0 + nrm(ks[next(it)], (dim,), 0.05),
        "ln2_b": nrm(ks[next(it)], (dim,), 0.05),
        # attention weights stored (in, out); PyTorch nn.Linear stores (out, in)
        "wqkv": nrm(ks[next(it)], (dim, 3 * dim)),
        "bqkv": jnp.zeros((3 * dim,), jnp.float32),      # qkv_bias=False
        "wproj": nrm(ks[next(it)], (dim, dim)),
        "bproj": nrm(ks[next(it)], (dim,), 0.02),
        # MoE gate router Mlp(dim, dim, n_routed_experts). The output bias is a
        # well-separated (permuted) ramp so the top-k expert set has margins far above
        # MXU f32 rounding differences -> kernel path and pure-JAX reference pick
        # identical experts deterministically.
        "r_w1": nrm(ks[next(it)], (dim, dim), 0.1),
        "r_b1": nrm(ks[next(it)], (dim,), 0.02),
        "r_w2": nrm(ks[next(it)], (dim, n_routed_experts), 0.02),
        "r_b2": 0.4 * jax.random.permutation(
            ks[next(it)], n_routed_experts).astype(jnp.float32),
        # routed experts, stacked along a leading expert axis
        "e_w1": nrm(ks[next(it)], (n_routed_experts, dim, hidden)),
        "e_b1": nrm(ks[next(it)], (n_routed_experts, hidden), 0.02),
        "e_w2": nrm(ks[next(it)], (n_routed_experts, hidden, dim)),
        "e_b2": nrm(ks[next(it)], (n_routed_experts, dim), 0.02),
        # shared experts Mlp(dim, dim * mlp_ratio * n_shared_experts)
        "s_w1": nrm(ks[next(it)], (dim, shared_hidden)),
        "s_b1": nrm(ks[next(it)], (shared_hidden,), 0.02),
        "s_w2": nrm(ks[next(it)], (shared_hidden, dim)),
        "s_b2": nrm(ks[next(it)], (dim,), 0.02),
    }


if __name__ == "__main__":
    B, S, D = 2, 8, 32
    num_heads = 4
    mlp_ratio = 2
    n_routed_experts = 14
    num_experts_per_tok = 4
    n_shared_experts = 2

    key = jax.random.PRNGKey(0)
    kx, kp = jax.random.split(key)
    x = jax.random.normal(kx, (B, S, D), dtype=jnp.float32)
    raw = make_params(kp, dim=D, n_routed_experts=n_routed_experts,
                      mlp_ratio=mlp_ratio, n_shared_experts=n_shared_experts)
    params = prepare_params(raw)          # one-time weight prep (outside the step jit)

    fwd = jax.jit(functools.partial(moe_block_forward, num_heads=num_heads,
                                    top_k=num_experts_per_tok))
    y, aux = fwd(x, params)
    y = jax.block_until_ready(y)

    y_ref, _ = reference_forward(x, raw, num_heads=num_heads,
                                 top_k=num_experts_per_tok)
    assert y.shape == (B, S, D), y.shape
    max_err = float(jnp.max(jnp.abs(y - y_ref)))
    assert jnp.allclose(y, y_ref, atol=2e-2, rtol=2e-2), f"mismatch, max |err|={max_err}"
    assert float(aux) == 0.0

    print("KERNEL_OK")
</pallas_src>

<mosaic_0001>
module attributes {stable_mosaic.version = 11 : i64} {
  func.func @_layernorm_kernel(%arg0: i32, %arg1: memref<8x32xf32, #tpu.memory_space<vmem>>, %arg2: memref<1x32xf32, #tpu.memory_space<vmem>>, %arg3: memref<1x32xf32, #tpu.memory_space<vmem>>, %arg4: memref<8x32xf32, #tpu.memory_space<vmem>>) attributes {dimension_semantics = [#tpu.dimension_semantics<parallel>], iteration_bounds = array<i64: 2>, scalar_prefetch = 0 : i64, scratch_operands = 0 : i64, tpu.core_type = #tpu.core_type<tc>, window_params = [{transform_indices = @transform_0, window_bounds = array<i64: 8, 32>}, {pipeline_mode = #tpu.pipeline_mode<synchronous>, transform_indices = @transform_1, window_bounds = array<i64: 1, 32>}, {pipeline_mode = #tpu.pipeline_mode<synchronous>, transform_indices = @transform_2, window_bounds = array<i64: 1, 32>}, {transform_indices = @transform_3, window_bounds = array<i64: 8, 32>}]} {
    %c0 = arith.constant 0 : index
    %c0_0 = arith.constant 0 : index
    %0 = vector.load %arg1[%c0, %c0_0] : memref<8x32xf32, #tpu.memory_space<vmem>>, vector<8x32xf32>
    %cst = arith.constant dense<0.000000e+00> : vector<8xf32>
    %1 = vector.multi_reduction <add>, %0, %cst [1] : vector<8x32xf32> to vector<8xf32>
    %2 = vector.shape_cast %1 : vector<8xf32> to vector<8x1xf32>
    %cst_1 = arith.constant 3.200000e+01 : f32
    %3 = vector.broadcast %cst_1 : f32 to vector<8x1xf32>
    %4 = arith.divf %2, %3 : vector<8x1xf32>
    %5 = vector.broadcast %4 : vector<8x1xf32> to vector<8x32xf32>
    %6 = arith.subf %0, %5 : vector<8x32xf32>
    %7 = arith.mulf %6, %6 : vector<8x32xf32>
    %cst_2 = arith.constant dense<0.000000e+00> : vector<8xf32>
    %8 = vector.multi_reduction <add>, %7, %cst_2 [1] : vector<8x32xf32> to vector<8xf32>
    %9 = vector.shape_cast %8 : vector<8xf32> to vector<8x1xf32>
    %cst_3 = arith.constant 3.200000e+01 : f32
    %10 = vector.broadcast %cst_3 : f32 to vector<8x1xf32>
    %11 = arith.divf %9, %10 : vector<8x1xf32>
    %12 = vector.broadcast %4 : vector<8x1xf32> to vector<8x32xf32>
    %13 = arith.subf %0, %12 : vector<8x32xf32>
    %cst_4 = arith.constant 9.99999974E-6 : f32
    %14 = vector.broadcast %cst_4 : f32 to vector<8x1xf32>
    %15 = arith.addf %11, %14 : vector<8x1xf32>
    %16 = math.rsqrt %15 : vector<8x1xf32>
    %17 = vector.broadcast %16 : vector<8x1xf32> to vector<8x32xf32>
    %18 = arith.mulf %13, %17 : vector<8x32xf32>
    %c0_5 = arith.constant 0 : index
    %c0_6 = arith.constant 0 : index
    %19 = vector.load %arg2[%c0_5, %c0_6] : memref<1x32xf32, #tpu.memory_space<vmem>>, vector<1x32xf32>
    %20 = vector.broadcast %19 : vector<1x32xf32> to vector<8x32xf32>
    %21 = arith.mulf %18, %20 : vector<8x32xf32>
    %c0_7 = arith.constant 0 : index
    %c0_8 = arith.constant 0 : index
    %22 = vector.load %arg3[%c0_7, %c0_8] : memref<1x32xf32, #tpu.memory_space<vmem>>, vector<1x32xf32>
    %23 = vector.broadcast %22 : vector<1x32xf32> to vector<8x32xf32>
    %24 = arith.addf %21, %23 : vector<8x32xf32>
    %c0_9 = arith.constant 0 : index
    %c0_10 = arith.constant 0 : index
    %25 = vector.load %arg4[%c0_9, %c0_10] : memref<8x32xf32, #tpu.memory_space<vmem>>, vector<8x32xf32>
    tpu.vector_store %arg4[%c0_9, %c0_10], %24 {strides = array<i32>} : memref<8x32xf32, #tpu.memory_space<vmem>>, vector<8x32xf32>,
    return
  }
  func.func @transform_0(%arg0: i32) -> (i32, i32) {
    %c0_i32 = arith.constant 0 : i32
    %c0_i32_0 = arith.constant 0 : i32
    return %arg0, %c0_i32 : i32, i32
  }
  func.func @transform_1(%arg0: i32) -> (i32, i32) {
    %c0_i32 = arith.constant 0 : i32
    %c0_i32_0 = arith.constant 0 : i32
    %c0_i32_1 = arith.constant 0 : i32
    return %c0_i32, %c0_i32_0 : i32, i32
  }
  func.func @transform_2(%arg0: i32) -> (i32, i32) {
    %c0_i32 = arith.constant 0 : i32
    %c0_i32_0 = arith.constant 0 : i32
    %c0_i32_1 = arith.constant 0 : i32
    return %c0_i32, %c0_i32_0 : i32, i32
  }
  func.func @transform_3(%arg0: i32) -> (i32, i32) {
    %c0_i32 = arith.constant 0 : i32
    %c0_i32_0 = arith.constant 0 : i32
    return %arg0, %c0_i32 : i32, i32
  }
}

module attributes {stable_mosaic.version = 11 : i64} {
  func.func @_linear_kernel(%arg0: i32, %arg1: memref<8x32xf32, #tpu.memory_space<vmem>>, %arg2: memref<32x96xf32, #tpu.memory_space<vmem>>, %arg3: memref<1x96xf32, #tpu.memory_space<vmem>>, %arg4: memref<8x96xf32, #tpu.memory_space<vmem>>) attributes {dimension_semantics = [#tpu.dimension_semantics<parallel>], iteration_bounds = array<i64: 2>, scalar_prefetch = 0 : i64, scratch_operands = 0 : i64, tpu.core_type = #tpu.core_type<tc>, window_params = [{transform_indices = @transform_0, window_bounds = array<i64: 8, 32>}, {pipeline_mode = #tpu.pipeline_mode<synchronous>, transform_indices = @transform_1, window_bounds = array<i64: 32, 96>}, {pipeline_mode = #tpu.pipeline_mode<synchronous>, transform_indices = @transform_2, window_bounds = array<i64: 1, 96>}, {transform_indices = @transform_3, window_bounds = array<i64: 8, 96>}]} {
    %c0 = arith.constant 0 : index
    %c0_0 = arith.constant 0 : index
    %0 = vector.load %arg1[%c0, %c0_0] : memref<8x32xf32, #tpu.memory_space<vmem>>, vector<8x32xf32>
    %c0_1 = arith.constant 0 : index
    %c0_2 = arith.constant 0 : index
    %1 = vector.load %arg2[%c0_1, %c0_2] : memref<32x96xf32, #tpu.memory_space<vmem>>, vector<32x96xf32>
    %cst = arith.constant dense<0.000000e+00> : vector<8x96xf32>
    %2 = tpu.matmul %0, %1, %cst {dimension_numbers = #tpu.dot_dimension_numbers<[1], [0], [0], [1], [0, 0, 1, 1], [], []>} : vector<8x32xf32>, vector<32x96xf32>, vector<8x96xf32> -> vector<8x96xf32>
    %c0_3 = arith.constant 0 : index
    %c0_4 = arith.constant 0 : index
    %3 = vector.load %arg3[%c0_3, %c0_4] : memref<1x96xf32, #tpu.memory_space<vmem>>, vector<1x96xf32>
    %4 = vector.broadcast %3 : vector<1x96xf32> to vector<8x96xf32>
    %5 = arith.addf %2, %4 : vector<8x96xf32>
    %c0_5 = arith.constant 0 : index
    %c0_6 = arith.constant 0 : index
    %6 = vector.load %arg4[%c0_5, %c0_6] : memref<8x96xf32, #tpu.memory_space<vmem>>, vector<8x96xf32>
    tpu.vector_store %arg4[%c0_5, %c0_6], %5 {strides = array<i32>} : memref<8x96xf32, #tpu.memory_space<vmem>>, vector<8x96xf32>,
    return
  }
  func.func @transform_0(%arg0: i32) -> (i32, i32) {
    %c0_i32 = arith.constant 0 : i32
    %c0_i32_0 = arith.constant 0 : i32
    return %arg0, %c0_i32 : i32, i32
  }
  func.func @transform_1(%arg0: i32) -> (i32, i32) {
    %c0_i32 = arith.constant 0 : i32
    %c0_i32_0 = arith.constant 0 : i32
    %c0_i32_1 = arith.constant 0 : i32
    return %c0_i32, %c0_i32_0 : i32, i32
  }
  func.func @transform_2(%arg0: i32) -> (i32, i32) {
    %c0_i32 = arith.constant 0 : i32
    %c0_i32_0 = arith.constant 0 : i32
    %c0_i32_1 = arith.constant 0 : i32
    return %c0_i32, %c0_i32_0 : i32, i32
  }
  func.func @transform_3(%arg0: i32) -> (i32, i32) {
    %c0_i32 = arith.constant 0 : i32
    %c0_i32_0 = arith.constant 0 : i32
    return %arg0, %c0_i32 : i32, i32
  }
}

module attributes {stable_mosaic.version = 11 : i64} {
  func.func @_linear_kernel(%arg0: i32, %arg1: memref<8x32xf32, #tpu.memory_space<vmem>>, %arg2: memref<32x32xf32, #tpu.memory_space<vmem>>, %arg3: memref<1x32xf32, #tpu.memory_space<vmem>>, %arg4: memref<8x32xf32, #tpu.memory_space<vmem>>) attributes {dimension_semantics = [#tpu.dimension_semantics<parallel>], iteration_bounds = array<i64: 2>, scalar_prefetch = 0 : i64, scratch_operands = 0 : i64, tpu.core_type = #tpu.core_type<tc>, window_params = [{transform_indices = @transform_0, window_bounds = array<i64: 8, 32>}, {pipeline_mode = #tpu.pipeline_mode<synchronous>, transform_indices = @transform_1, window_bounds = array<i64: 32, 32>}, {pipeline_mode = #tpu.pipeline_mode<synchronous>, transform_indices = @transform_2, window_bounds = array<i64: 1, 32>}, {transform_indices = @transform_3, window_bounds = array<i64: 8, 32>}]} {
    %c0 = arith.constant 0 : index
    %c0_0 = arith.constant 0 : index
    %0 = vector.load %arg1[%c0, %c0_0] : memref<8x32xf32, #tpu.memory_space<vmem>>, vector<8x32xf32>
    %c0_1 = arith.constant 0 : index
    %c0_2 = arith.constant 0 : index
    %1 = vector.load %arg2[%c0_1, %c0_2] : memref<32x32xf32, #tpu.memory_space<vmem>>, vector<32x32xf32>
    %cst = arith.constant dense<0.000000e+00> : vector<8x32xf32>
    %2 = tpu.matmul %0, %1, %cst {dimension_numbers = #tpu.dot_dimension_numbers<[1], [0], [0], [1], [0, 0, 1, 1], [], []>} : vector<8x32xf32>, vector<32x32xf32>, vector<8x32xf32> -> vector<8x32xf32>
    %c0_3 = arith.constant 0 : index
    %c0_4 = arith.constant 0 : index
    %3 = vector.load %arg3[%c0_3, %c0_4] : memref<1x32xf32, #tpu.memory_space<vmem>>, vector<1x32xf32>
    %4 = vector.broadcast %3 : vector<1x32xf32> to vector<8x32xf32>
    %5 = arith.addf %2, %4 : vector<8x32xf32>
    %c0_5 = arith.constant 0 : index
    %c0_6 = arith.constant 0 : index
    %6 = vector.load %arg4[%c0_5, %c0_6] : memref<8x32xf32, #tpu.memory_space<vmem>>, vector<8x32xf32>
    tpu.vector_store %arg4[%c0_5, %c0_6], %5 {strides = array<i32>} : memref<8x32xf32, #tpu.memory_space<vmem>>, vector<8x32xf32>,
    return
  }
  func.func @transform_0(%arg0: i32) -> (i32, i32) {
    %c0_i32 = arith.constant 0 : i32
    %c0_i32_0 = arith.constant 0 : i32
    return %arg0, %c0_i32 : i32, i32
  }
  func.func @transform_1(%arg0: i32) -> (i32, i32) {
    %c0_i32 = arith.constant 0 : i32
    %c0_i32_0 = arith.constant 0 : i32
    %c0_i32_1 = arith.constant 0 : i32
    return %c0_i32, %c0_i32_0 : i32, i32
  }
  func.func @transform_2(%arg0: i32) -> (i32, i32) {
    %c0_i32 = arith.constant 0 : i32
    %c0_i32_0 = arith.constant 0 : i32
    %c0_i32_1 = arith.constant 0 : i32
    return %c0_i32, %c0_i32_0 : i32, i32
  }
  func.func @transform_3(%arg0: i32) -> (i32, i32) {
    %c0_i32 = arith.constant 0 : i32
    %c0_i32_0 = arith.constant 0 : i32
    return %arg0, %c0_i32 : i32, i32
  }
}

module attributes {stable_mosaic.version = 11 : i64} {
  func.func @_moe_fused_kernel(%arg0: i32, %arg1: i32, %arg2: i32, %arg3: memref<2x4xi32, #tpu.memory_space<smem>>, %arg4: memref<2x4xf32, #tpu.memory_space<smem>>, %arg5: memref<1x8x32xf32, #tpu.memory_space<vmem>>, %arg6: memref<1x8x32xf32, #tpu.memory_space<vmem>>, %arg7: memref<1x32x128xf32, #tpu.memory_space<vmem>>, %arg8: memref<1x1x128xf32, #tpu.memory_space<vmem>>, %arg9: memref<1x128x32xf32, #tpu.memory_space<vmem>>, %arg10: memref<1x1x32xf32, #tpu.memory_space<vmem>>, %arg11: memref<32x128xf32, #tpu.memory_space<vmem>>, %arg12: memref<1x128xf32, #tpu.memory_space<vmem>>, %arg13: memref<128x32xf32, #tpu.memory_space<vmem>>, %arg14: memref<1x32xf32, #tpu.memory_space<vmem>>, %arg15: memref<1x8x32xf32, #tpu.memory_space<vmem>>, %arg16: memref<8x32xf32, #tpu.memory_space<vmem>>) attributes {dimension_semantics = [#tpu.dimension_semantics<parallel>, #tpu.dimension_semantics<parallel>, #tpu.dimension_semantics<arbitrary>], iteration_bounds = array<i64: 2, 1, 4>, scalar_prefetch = 2 : i64, scratch_operands = 1 : i64, tpu.core_type = #tpu.core_type<tc>, window_params = [{transform_indices = @transform_0, window_bounds = array<i64: 1, 8, 32>}, {transform_indices = @transform_1, window_bounds = array<i64: 1, 8, 32>}, {transform_indices = @transform_2, window_bounds = array<i64: 1, 32, 128>}, {transform_indices = @transform_3, window_bounds = array<i64: 1, 1, 128>}, {transform_indices = @transform_4, window_bounds = array<i64: 1, 128, 32>}, {transform_indices = @transform_5, window_bounds = array<i64: 1, 1, 32>}, {pipeline_mode = #tpu.pipeline_mode<synchronous>, transform_indices = @transform_6, window_bounds = array<i64: 32, 128>}, {pipeline_mode = #tpu.pipeline_mode<synchronous>, transform_indices = @transform_7, window_bounds = array<i64: 1, 128>}, {pipeline_mode = #tpu.pipeline_mode<synchronous>, transform_indices = @transform_8, window_bounds = array<i64: 128, 32>}, {pipeline_mode = #tpu.pipeline_mode<synchronous>, transform_indices = @transform_9, window_bounds = array<i64: 1, 32>}, {transform_indices = @transform_10, window_bounds = array<i64: 1, 8, 32>}]} {
    %c0_i32 = arith.constant 0 : i32
    %0 = arith.cmpi eq, %arg2, %c0_i32 : i32
    %1 = arith.extui %0 : i1 to i32
    %c0_i32_0 = arith.constant 0 : i32
    %2 = arith.cmpi ne, %1, %c0_i32_0 : i32
    scf.if %2 {
      %cst_25 = arith.constant 0.000000e+00 : f32
      %43 = vector.broadcast %cst_25 : f32 to vector<8x32xf32>
      %c0_26 = arith.constant 0 : index
      %c0_27 = arith.constant 0 : index
      %44 = vector.load %arg16[%c0_26, %c0_27] : memref<8x32xf32, #tpu.memory_space<vmem>>, vector<8x32xf32>
      tpu.vector_store %arg16[%c0_26, %c0_27], %43 {strides = array<i32>} : memref<8x32xf32, #tpu.memory_space<vmem>>, vector<8x32xf32>,
    } else {
    }
    %c0 = arith.constant 0 : index
    %c0_1 = arith.constant 0 : index
    %c0_2 = arith.constant 0 : index
    %3 = vector.load %arg5[%c0, %c0_1, %c0_2] : memref<1x8x32xf32, #tpu.memory_space<vmem>>, vector<1x8x32xf32>
    %4 = vector.shape_cast %3 : vector<1x8x32xf32> to vector<8x32xf32>
    %5 = arith.index_cast %arg0 : i32 to index
    %6 = arith.index_cast %arg2 : i32 to index
    %7 = memref.load %arg4[%5, %6] : memref<2x4xf32, #tpu.memory_space<smem>>
    %c0_3 = arith.constant 0 : index
    %c0_4 = arith.constant 0 : index
    %c0_5 = arith.constant 0 : index
    %8 = vector.load %arg7[%c0_3, %c0_4, %c0_5] : memref<1x32x128xf32, #tpu.memory_space<vmem>>, vector<1x32x128xf32>
    %9 = vector.shape_cast %8 : vector<1x32x128xf32> to vector<32x128xf32>
    %cst = arith.constant dense<0.000000e+00> : vector<8x128xf32>
    %10 = tpu.matmul %4, %9, %cst {dimension_numbers = #tpu.dot_dimension_numbers<[1], [0], [0], [1], [0, 0, 1, 1], [], []>} : vector<8x32xf32>, vector<32x128xf32>, vector<8x128xf32> -> vector<8x128xf32>
    %c0_6 = arith.constant 0 : index
    %c0_7 = arith.constant 0 : index
    %c0_8 = arith.constant 0 : index
    %11 = vector.load %arg8[%c0_6, %c0_7, %c0_8] : memref<1x1x128xf32, #tpu.memory_space<vmem>>, vector<1x1x128xf32>
    %12 = vector.shape_cast %11 : vector<1x1x128xf32> to vector<1x128xf32>
    %13 = vector.broadcast %12 : vector<1x128xf32> to vector<8x128xf32>
    %14 = arith.addf %10, %13 : vector<8x128xf32>
    %15 = arith.mulf %14, %14 : vector<8x128xf32>
    %16 = arith.mulf %14, %15 : vector<8x128xf32>
    %cst_9 = arith.constant 4.471500e-02 : f32
    %17 = vector.broadcast %cst_9 : f32 to vector<8x128xf32>
    %18 = arith.mulf %17, %16 : vector<8x128xf32>
    %19 = arith.addf %14, %18 : vector<8x128xf32>
    %cst_10 = arith.constant 0.797884583 : f32
    %20 = vector.broadcast %cst_10 : f32 to vector<8x128xf32>
    %21 = arith.mulf %20, %19 : vector<8x128xf32>
    %22 = math.tanh %21 : vector<8x128xf32>
    %cst_11 = arith.constant 1.000000e+00 : f32
    %23 = vector.broadcast %cst_11 : f32 to vector<8x128xf32>
    %24 = arith.addf %23, %22 : vector<8x128xf32>
    %cst_12 = arith.constant 5.000000e-01 : f32
    %25 = vector.broadcast %cst_12 : f32 to vector<8x128xf32>
    %26 = arith.mulf %25, %24 : vector<8x128xf32>
    %27 = arith.mulf %14, %26 : vector<8x128xf32>
    %c0_13 = arith.constant 0 : index
    %c0_14 = arith.constant 0 : index
    %c0_15 = arith.constant 0 : index
    %28 = vector.load %arg9[%c0_13, %c0_14, %c0_15] : memref<1x128x32xf32, #tpu.memory_space<vmem>>, vector<1x128x32xf32>
    %29 = vector.shape_cast %28 : vector<1x128x32xf32> to vector<128x32xf32>
    %cst_16 = arith.constant dense<0.000000e+00> : vector<8x32xf32>
    %30 = tpu.matmul %27, %29, %cst_16 {dimension_numbers = #tpu.dot_dimension_numbers<[1], [0], [0], [1], [0, 0, 1, 1], [], []>} : vector<8x128xf32>, vector<128x32xf32>, vector<8x32xf32> -> vector<8x32xf32>
    %c0_17 = arith.constant 0 : index
    %c0_18 = arith.constant 0 : index
    %c0_19 = arith.constant 0 : index
    %31 = vector.load %arg10[%c0_17, %c0_18, %c0_19] : memref<1x1x32xf32, #tpu.memory_space<vmem>>, vector<1x1x32xf32>
    %32 = vector.shape_cast %31 : vector<1x1x32xf32> to vector<1x32xf32>
    %33 = vector.broadcast %32 : vector<1x32xf32> to vector<8x32xf32>
    %34 = arith.addf %30, %33 : vector<8x32xf32>
    %c0_20 = arith.constant 0 : index
    %c0_21 = arith.constant 0 : index
    %35 = vector.load %arg16[%c0_20, %c0_21] : memref<8x32xf32, #tpu.memory_space<vmem>>, vector<8x32xf32>
    %36 = vector.broadcast %7 : f32 to vector<8x32xf32>
    %37 = arith.mulf %36, %34 : vector<8x32xf32>
    %38 = arith.addf %35, %37 : vector<8x32xf32>
    %c0_22 = arith.constant 0 : index
    %c0_23 = arith.constant 0 : index
    %39 = vector.load %arg16[%c0_22, %c0_23] : memref<8x32xf32, #tpu.memory_space<vmem>>, vector<8x32xf32>
    tpu.vector_store %arg16[%c0_22, %c0_23], %38 {strides = array<i32>} : memref<8x32xf32, #tpu.memory_space<vmem>>, vector<8x32xf32>,
    %c3_i32 = arith.constant 3 : i32
    %40 = arith.cmpi eq, %arg2, %c3_i32 : i32
    %41 = arith.extui %40 : i1 to i32
    %c0_i32_24 = arith.constant 0 : i32
    %42 = arith.cmpi ne, %41, %c0_i32_24 : i32
    scf.if %42 {
      %c0_25 = arith.constant 0 : index
      %c0_26 = arith.constant 0 : index
      %43 = vector.load %arg11[%c0_25, %c0_26] : memref<32x128xf32, #tpu.memory_space<vmem>>, vector<32x128xf32>
      %cst_27 = arith.constant dense<0.000000e+00> : vector<8x128xf32>
      %44 = tpu.matmul %4, %43, %cst_27 {dimension_numbers = #tpu.dot_dimension_numbers<[1], [0], [0], [1], [0, 0, 1, 1], [], []>} : vector<8x32xf32>, vector<32x128xf32>, vector<8x128xf32> -> vector<8x128xf32>
      %c0_28 = arith.constant 0 : index
      %c0_29 = arith.constant 0 : index
      %45 = vector.load %arg12[%c0_28, %c0_29] : memref<1x128xf32, #tpu.memory_space<vmem>>, vector<1x128xf32>
      %46 = vector.broadcast %45 : vector<1x128xf32> to vector<8x128xf32>
      %47 = arith.addf %44, %46 : vector<8x128xf32>
      %48 = arith.mulf %47, %47 : vector<8x128xf32>
      %49 = arith.mulf %47, %48 : vector<8x128xf32>
      %cst_30 = arith.constant 4.471500e-02 : f32
      %50 = vector.broadcast %cst_30 : f32 to vector<8x128xf32>
      %51 = arith.mulf %50, %49 : vector<8x128xf32>
      %52 = arith.addf %47, %51 : vector<8x128xf32>
      %cst_31 = arith.constant 0.797884583 : f32
      %53 = vector.broadcast %cst_31 : f32 to vector<8x128xf32>
      %54 = arith.mulf %53, %52 : vector<8x128xf32>
      %55 = math.tanh %54 : vector<8x128xf32>
      %cst_32 = arith.constant 1.000000e+00 : f32
      %56 = vector.broadcast %cst_32 : f32 to vector<8x128xf32>
      %57 = arith.addf %56, %55 : vector<8x128xf32>
      %cst_33 = arith.constant 5.000000e-01 : f32
      %58 = vector.broadcast %cst_33 : f32 to vector<8x128xf32>
      %59 = arith.mulf %58, %57 : vector<8x128xf32>
      %60 = arith.mulf %47, %59 : vector<8x128xf32>
      %c0_34 = arith.constant 0 : index
      %c0_35 = arith.constant 0 : index
      %61 = vector.load %arg13[%c0_34, %c0_35] : memref<128x32xf32, #tpu.memory_space<vmem>>, vector<128x32xf32>
      %cst_36 = arith.constant dense<0.000000e+00> : vector<8x32xf32>
      %62 = tpu.matmul %60, %61, %cst_36 {dimension_numbers = #tpu.dot_dimension_numbers<[1], [0], [0], [1], [0, 0, 1, 1], [], []>} : vector<8x128xf32>, vector<128x32xf32>, vector<8x32xf32> -> vector<8x32xf32>
      %c0_37 = arith.constant 0 : index
      %c0_38 = arith.constant 0 : index
      %63 = vector.load %arg14[%c0_37, %c0_38] : memref<1x32xf32, #tpu.memory_space<vmem>>, vector<1x32xf32>
      %64 = vector.broadcast %63 : vector<1x32xf32> to vector<8x32xf32>
      %65 = arith.addf %62, %64 : vector<8x32xf32>
      %c0_39 = arith.constant 0 : index
      %c0_40 = arith.constant 0 : index
      %66 = vector.load %arg16[%c0_39, %c0_40] : memref<8x32xf32, #tpu.memory_space<vmem>>, vector<8x32xf32>
      %67 = arith.addf %66, %65 : vector<8x32xf32>
      %c0_41 = arith.constant 0 : index
      %c0_42 = arith.constant 0 : index
      %c0_43 = arith.constant 0 : index
      %68 = vector.load %arg6[%c0_41, %c0_42, %c0_43] : memref<1x8x32xf32, #tpu.memory_space<vmem>>, vector<1x8x32xf32>
      %69 = vector.shape_cast %68 : vector<1x8x32xf32> to vector<8x32xf32>
      %70 = arith.addf %67, %69 : vector<8x32xf32>
      %c0_44 = arith.constant 0 : index
      %c0_45 = arith.constant 0 : index
      %c0_46 = arith.constant 0 : index
      %71 = vector.load %arg15[%c0_44, %c0_45, %c0_46] : memref<1x8x32xf32, #tpu.memory_space<vmem>>, vector<1x8x32xf32>
      %72 = vector.shape_cast %71 : vector<1x8x32xf32> to vector<8x32xf32>
      %73 = vector.shape_cast %70 : vector<8x32xf32> to vector<1x8x32xf32>
      tpu.vector_store %arg15[%c0_44, %c0_45, %c0_46], %73 {strides = array<i32>} : memref<1x8x32xf32, #tpu.memory_space<vmem>>, vector<1x8x32xf32>,
    } else {
    }
    return
  }
  func.func @transform_0(%arg0: i32, %arg1: i32, %arg2: i32, %arg3: memref<2x4xi32, #tpu.memory_space<smem>>, %arg4: memref<2x4xf32, #tpu.memory_space<smem>>) -> (i32, i32, i32) {
    %c0_i32 = arith.constant 0 : i32
    %c0_i32_0 = arith.constant 0 : i32
    return %arg0, %arg1, %c0_i32 : i32, i32, i32
  }
  func.func @transform_1(%arg0: i32, %arg1: i32, %arg2: i32, %arg3: memref<2x4xi32, #tpu.memory_space<smem>>, %arg4: memref<2x4xf32, #tpu.memory_space<smem>>) -> (i32, i32, i32) {
    %c0_i32 = arith.constant 0 : i32
    %c0_i32_0 = arith.constant 0 : i32
    return %arg0, %arg1, %c0_i32 : i32, i32, i32
  }
  func.func @transform_2(%arg0: i32, %arg1: i32, %arg2: i32, %arg3: memref<2x4xi32, #tpu.memory_space<smem>>, %arg4: memref<2x4xf32, #tpu.memory_space<smem>>) -> (i32, i32, i32) {
    %0 = arith.index_cast %arg0 : i32 to index
    %1 = arith.index_cast %arg2 : i32 to index
    %2 = memref.load %arg3[%0, %1] : memref<2x4xi32, #tpu.memory_space<smem>>
    %c0_i32 = arith.constant 0 : i32
    %c0_i32_0 = arith.constant 0 : i32
    %c0_i32_1 = arith.constant 0 : i32
    return %2, %c0_i32, %c0_i32_0 : i32, i32, i32
  }
  func.func @transform_3(%arg0: i32, %arg1: i32, %arg2: i32, %arg3: memref<2x4xi32, #tpu.memory_space<smem>>, %arg4: memref<2x4xf32, #tpu.memory_space<smem>>) -> (i32, i32, i32) {
    %0 = arith.index_cast %arg0 : i32 to index
    %1 = arith.index_cast %arg2 : i32 to index
    %2 = memref.load %arg3[%0, %1] : memref<2x4xi32, #tpu.memory_space<smem>>
    %c0_i32 = arith.constant 0 : i32
    %c0_i32_0 = arith.constant 0 : i32
    %c0_i32_1 = arith.constant 0 : i32
    return %2, %c0_i32, %c0_i32_0 : i32, i32, i32
  }
  func.func @transform_4(%arg0: i32, %arg1: i32, %arg2: i32, %arg3: memref<2x4xi32, #tpu.memory_space<smem>>, %arg4: memref<2x4xf32, #tpu.memory_space<smem>>) -> (i32, i32, i32) {
    %0 = arith.index_cast %arg0 : i32 to index
    %1 = arith.index_cast %arg2 : i32 to index
    %2 = memref.load %arg3[%0, %1] : memref<2x4xi32, #tpu.memory_space<smem>>
    %c0_i32 = arith.constant 0 : i32
    %c0_i32_0 = arith.constant 0 : i32
    %c0_i32_1 = arith.constant 0 : i32
    return %2, %c0_i32, %c0_i32_0 : i32, i32, i32
  }
  func.func @transform_5(%arg0: i32, %arg1: i32, %arg2: i32, %arg3: memref<2x4xi32, #tpu.memory_space<smem>>, %arg4: memref<2x4xf32, #tpu.memory_space<smem>>) -> (i32, i32, i32) {
    %0 = arith.index_cast %arg0 : i32 to index
    %1 = arith.index_cast %arg2 : i32 to index
    %2 = memref.load %arg3[%0, %1] : memref<2x4xi32, #tpu.memory_space<smem>>
    %c0_i32 = arith.constant 0 : i32
    %c0_i32_0 = arith.constant 0 : i32
    %c0_i32_1 = arith.constant 0 : i32
    return %2, %c0_i32, %c0_i32_0 : i32, i32, i32
  }
  func.func @transform_6(%arg0: i32, %arg1: i32, %arg2: i32, %arg3: memref<2x4xi32, #tpu.memory_space<smem>>, %arg4: memref<2x4xf32, #tpu.memory_space<smem>>) -> (i32, i32) {
    %c0_i32 = arith.constant 0 : i32
    %c0_i32_0 = arith.constant 0 : i32
    %c0_i32_1 = arith.constant 0 : i32
    return %c0_i32, %c0_i32_0 : i32, i32
  }
  func.func @transform_7(%arg0: i32, %arg1: i32, %arg2: i32, %arg3: memref<2x4xi32, #tpu.memory_space<smem>>, %arg4: memref<2x4xf32, #tpu.memory_space<smem>>) -> (i32, i32) {
    %c0_i32 = arith.constant 0 : i32
    %c0_i32_0 = arith.constant 0 : i32
    %c0_i32_1 = arith.constant 0 : i32
    return %c0_i32, %c0_i32_0 : i32, i32
  }
  func.func @transform_8(%arg0: i32, %arg1: i32, %arg2: i32, %arg3: memref<2x4xi32, #tpu.memory_space<smem>>, %arg4: memref<2x4xf32, #tpu.memory_space<smem>>) -> (i32, i32) {
    %c0_i32 = arith.constant 0 : i32
    %c0_i32_0 = arith.constant 0 : i32
    %c0_i32_1 = arith.constant 0 : i32
    return %c0_i32, %c0_i32_0 : i32, i32
  }
  func.func @transform_9(%arg0: i32, %arg1: i32, %arg2: i32, %arg3: memref<2x4xi32, #tpu.memory_space<smem>>, %arg4: memref<2x4xf32, #tpu.memory_space<smem>>) -> (i32, i32) {
    %c0_i32 = arith.constant 0 : i32
    %c0_i32_0 = arith.constant 0 : i32
    %c0_i32_1 = arith.constant 0 : i32
    return %c0_i32, %c0_i32_0 : i32, i32
  }
  func.func @transform_10(%arg0: i32, %arg1: i32, %arg2: i32, %arg3: memref<2x4xi32, #tpu.memory_space<smem>>, %arg4: memref<2x4xf32, #tpu.memory_space<smem>>) -> (i32, i32, i32) {
    %c0_i32 = arith.constant 0 : i32
    %c0_i32_0 = arith.constant 0 : i32
    return %arg0, %arg1, %c0_i32 : i32, i32, i32
  }
}

</mosaic_0001>

<bundles_post_ra>
// kernel: moe_block_forward.6
= control target key start
LH: loop header
LB: loop body
LE: loop exit
PB: predicated region body
PF: predicated region fallthrough
CT: control target
= control target key end

     0   :  { %s382_s12 = smov 0   ;;  %s414_s0 = inlined_call_operand.vmem [shape: f32[16,32], index: 0, kind: input, shape index: {}]   ;;  %s415_s1 = inlined_call_operand.vmem [shape: f32[32,96], index: 1, kind: input, shape index: {}]   ;;  %s416_s2 = inlined_call_operand.vmem [shape: f32[1,96], index: 2, kind: input, shape index: {}]   ;;  %s417_s3 = inlined_call_operand.vmem [shape: f32[16,96], index: 3, kind: output, shape index: {}]  }
   0x1 LB: > { %s307_s13 = sadd.s32 4294967295, %s357_s12   ;;  %p311_p0 = scmp.ge.s32.totalorder %s357_s12, 1  ;;  %s357_s12 = sphi %s382_s12, %s13_s12  }
   0x2   : > { %p136_p1 = scmp.lt.s32.totalorder %s357_s12, 3 }
   0x4   : > { %p137_p2 = pnand %p311_p0, %p136_p1 }
   0x5   : > { %v167_v0 = vld [vmem:[%s415_s1] sm:$0xff] (!%p137_p2)  ;;  %v168_v1 = vld [vmem:[%s415_s1 + $0x8] sm:$0xff] (!%p137_p2)  ;;  %v169_v2 = vld [vmem:[%s415_s1 + $0x10] sm:$0xff] (!%p137_p2)  ;;  %v359_v3 = vmov (!%p137_p2), 0.0|0.0   ;;  %vm360_vm0 = vmmov (!%p137_p2), 0   ;;  %v361_v6 = vmov (!%p137_p2), 0.0  }
   0x6   : > { %140 = sbr.rel (%p137_p2) target bundleno = 232 (0xe8), region = 32  ;;  %334 = vmatprep.subr.bf16.mxu0 (!%p137_p2), %v359_v3  ;;  %v335_v4 = vpack.c.bf16 (!%p137_p2), %v168_v1, %v167_v0  ;;  %v170_v5 = vld [vmem:[%s415_s1 + $0x18] sm:$0xff] (!%p137_p2)  ;;  %331 = vmatprep.mubr.msk.f32.mxu0 (!%p137_p2), %vm360_vm0, %v361_v6  ;;  %p158_p3 = scmp.lt.s32.totalorder (!%p137_p2), %s307_s13, 1  ;;  %vm178_vm1 = vcmask (!%p137_p2), 261120   ;;  %v314_v9 = vld [vmem:[%s416_s2] ss:$0 sm:$0xff] (!%p137_p2) }
   0x7   : > { %v338_v7 = vpack.c.bf16 (!%p137_p2), %v170_v5, %v169_v2  ;;  %vm252_vm2 = vcmask (!%p137_p2), 785408  }
   0x8   : > { %336 = vmatpush3.bf16.msra.mxu0 (!%p137_p2), %v335_v4 }
   0x9   : > { %337 = vmatprep.subr.bf16.mxu0 (!%p137_p2), %v359_v3 }
   0xc   : > { %339 = vmatpush3.bf16.msra.mxu0 (!%p137_p2), %v338_v7 }
   0xd   : > { %s419_s13 = smov (!%p158_p3, %s307_s13), 1 }
   0xe   : > { %s312_s22 = sshll.u32 %s419_s13, 3 }
   0xf   : > { %s161_s25 = scalar_lea.vmem %s414_s0, %s312_s22  ;;  %s165_s30 = scalar_lea.vmem %s417_s3, %s312_s22 }
  0x10   : > { %v166_v8 = vld [vmem:[%s161_s25] sm:$0xff] }
  0x11   : > { %332 = vmatmul.mubr.msk.f32.vlgmr.msra.gmra.mrb[0].mxu0 %vm178_vm1, %v166_v8 }
  0xe4   : > { %v248_v10 = vpop.f32.mrb[0].mxu0 }
  0xe5   : > { %v249_v11 = vadd.f32 %v314_v9, %v248_v10  ;;  %v333_v12 = vpop.f32.mrb[1].mxu0 }
  0xe7   : > { %253 = vst.msk [vmem:[%s165_s30] sm:$0xff] %vm252_vm2, %v249_v11 }
  0xe8 PF: > { %s13_s12 = sadd.s32 1, %s357_s12  }
  0xe9   : > { %p10_p4 = scmp.ge.s32.totalorder %s13_s12, 4  }
  0xeb   :  { %12 = sbr.rel (!%p10_p4) target bundleno = 1 (0x1), region = 62 }

// kernel: moe_block_forward.5
= control target key start
LH: loop header
LB: loop body
LE: loop exit
PB: predicated region body
PF: predicated region fallthrough
CT: control target
= control target key end

     0   :  { %s301_s12 = smov 0   ;;  %s327_s0 = inlined_call_operand.vmem [shape: f32[16,32], index: 0, kind: input, shape index: {}]   ;;  %s328_s1 = inlined_call_operand.vmem [shape: f32[1,32], index: 1, kind: input, shape index: {}]   ;;  %s329_s2 = inlined_call_operand.vmem [shape: f32[1,32], index: 2, kind: input, shape index: {}]   ;;  %s330_s3 = inlined_call_operand.vmem [shape: f32[16,32], index: 3, kind: output, shape index: {}]  }
   0x1 LB: > { %s252_s13 = sadd.s32 4294967295, %s279_s12   ;;  %p256_p0 = scmp.ge.s32.totalorder %s279_s12, 1  ;;  %s279_s12 = sphi %s301_s12, %s13_s12  }
   0x2   : > { %p136_p1 = scmp.lt.s32.totalorder %s279_s12, 3 }
   0x4   : > { %p137_p2 = pnand %p256_p0, %p136_p1 }
   0x5   : > { %p158_p3 = scmp.lt.s32.totalorder (!%p137_p2), %s252_s13, 1  ;;  %vm167_vm0 = vcmask (!%p137_p2), 261120   ;;  %v259_v11 = vld [vmem:[%s328_s1] ss:$0 sm:$0xff] (!%p137_p2) }
   0x6   : > { %140 = sbr.rel (%p137_p2) target bundleno = 331 (0x14b), region = 32  ;;  %v260_v13 = vld [vmem:[%s329_s2] ss:$0 sm:$0xff] (!%p137_p2) }
   0xd   : > { %s332_s13 = smov (!%p158_p3, %s252_s13), 1 }
   0xe   : > { %s257_s14 = sshll.u32 %s332_s13, 3 }
   0xf   : > { %s161_s17 = scalar_lea.vmem %s327_s0, %s257_s14  ;;  %s165_s24 = scalar_lea.vmem %s330_s3, %s257_s14 }
  0x10   : > { %v166_v0 = vld [vmem:[%s161_s17] sm:$0xff] }
  0x11   : > { %v168_v1 = vsel %vm167_vm0, %v166_v0, 0.0 }
  0x12   : > { %169 = vadd.xlane.f32.xlu0 %v168_v1 }
  0x9f   : > { %v170_v2 = vpop.xlane.xlu0 %169 }
  0xa0   : > { %v172_v3 = vmul.f32 0.03125, %v170_v2 }
  0xa2   : > { %v173_v4 = vsub.f32 %v166_v0, %v172_v3 }
  0xa4   : > { %v174_v5 = vmul.f32 %v173_v4, %v173_v4 }
  0xa6   : > { %v175_v6 = vsel %vm167_vm0, %v174_v5, 0.0 }
  0xa7   : > { %176 = vadd.xlane.f32.xlu0 %v175_v6 }
 0x134   : > { %v177_v7 = vpop.xlane.xlu0 %176 }
 0x135   : > { %v178_v8 = vmul.f32 0.03125, %v177_v7 }
 0x137   : > { %v179_v9 = vadd.f32 1e-05, %v178_v8 }
 0x139   : > { %271 = vrsqrt.f32 %v179_v9 }
 0x143   : > { %v272_v10 = vpop.eup %271 }
 0x144   : > { %v181_v12 = vmul.f32 %v272_v10, %v173_v4 }
 0x146   : > { %v189_v14 = vmul.f32 %v259_v11, %v181_v12 }
 0x148   : > { %v197_v15 = vadd.f32 %v260_v13, %v189_v14 }
 0x14a   : > { %198 = vst.msk [vmem:[%s165_s24] sm:$0xff] %vm167_vm0, %v197_v15 }
 0x14b PF: > { %s13_s12 = sadd.s32 1, %s279_s12  }
 0x14c   : > { %p10_p4 = scmp.ge.s32.totalorder %s13_s12, 4  }
 0x14e   :  { %12 = sbr.rel (!%p10_p4) target bundleno = 1 (0x1), region = 62 }

// kernel: moe_block_forward.7
= control target key start
LH: loop header
LB: loop body
LE: loop exit
PB: predicated region body
PF: predicated region fallthrough
CT: control target
= control target key end

     0   :  { %s381_s12 = smov 0   ;;  %s413_s0 = inlined_call_operand.vmem [shape: f32[16,32], index: 0, kind: input, shape index: {}]   ;;  %s414_s1 = inlined_call_operand.vmem [shape: f32[32,32], index: 1, kind: input, shape index: {}]   ;;  %s415_s2 = inlined_call_operand.vmem [shape: f32[1,32], index: 2, kind: input, shape index: {}]   ;;  %s416_s3 = inlined_call_operand.vmem [shape: f32[16,32], index: 3, kind: output, shape index: {}]  }
   0x1 LB: > { %s306_s13 = sadd.s32 4294967295, %s356_s12   ;;  %p310_p0 = scmp.ge.s32.totalorder %s356_s12, 1  ;;  %s356_s12 = sphi %s381_s12, %s13_s12  }
   0x2   : > { %p136_p1 = scmp.lt.s32.totalorder %s356_s12, 3 }
   0x4   : > { %p137_p2 = pnand %p310_p0, %p136_p1 }
   0x5   : > { %v167_v0 = vld [vmem:[%s414_s1] sm:$0xff] (!%p137_p2)  ;;  %v168_v1 = vld [vmem:[%s414_s1 + $0x8] sm:$0xff] (!%p137_p2)  ;;  %v169_v2 = vld [vmem:[%s414_s1 + $0x10] sm:$0xff] (!%p137_p2)  ;;  %v358_v3 = vmov (!%p137_p2), 0.0|0.0   ;;  %vm359_vm0 = vmmov (!%p137_p2), 0   ;;  %v360_v6 = vmov (!%p137_p2), 0.0  }
   0x6   : > { %140 = sbr.rel (%p137_p2) target bundleno = 232 (0xe8), region = 32  ;;  %333 = vmatprep.subr.bf16.mxu0 (!%p137_p2), %v358_v3  ;;  %v334_v4 = vpack.c.bf16 (!%p137_p2), %v168_v1, %v167_v0  ;;  %v170_v5 = vld [vmem:[%s414_s1 + $0x18] sm:$0xff] (!%p137_p2)  ;;  %330 = vmatprep.mubr.msk.f32.mxu0 (!%p137_p2), %vm359_vm0, %v360_v6  ;;  %p158_p3 = scmp.lt.s32.totalorder (!%p137_p2), %s306_s13, 1  ;;  %vm178_vm1 = vcmask (!%p137_p2), 261120   ;;  %v313_v9 = vld [vmem:[%s415_s2] ss:$0 sm:$0xff] (!%p137_p2) }
   0x7   : > { %v337_v7 = vpack.c.bf16 (!%p137_p2), %v170_v5, %v169_v2 }
   0x8   : > { %335 = vmatpush3.bf16.msra.mxu0 (!%p137_p2), %v334_v4 }
   0x9   : > { %336 = vmatprep.subr.bf16.mxu0 (!%p137_p2), %v358_v3 }
   0xc   : > { %338 = vmatpush3.bf16.msra.mxu0 (!%p137_p2), %v337_v7 }
   0xd   : > { %s418_s13 = smov (!%p158_p3, %s306_s13), 1 }
   0xe   : > { %s311_s22 = sshll.u32 %s418_s13, 3 }
   0xf   : > { %s161_s25 = scalar_lea.vmem %s413_s0, %s311_s22  ;;  %s165_s30 = scalar_lea.vmem %s416_s3, %s311_s22 }
  0x10   : > { %v166_v8 = vld [vmem:[%s161_s25] sm:$0xff] }
  0x11   : > { %331 = vmatmul.mubr.msk.f32.vlgmr.msra.gmra.mrb[0].mxu0 %vm178_vm1, %v166_v8 }
  0xe4   : > { %v248_v10 = vpop.f32.mrb[0].mxu0 }
  0xe5   : > { %v249_v11 = vadd.f32 %v313_v9, %v248_v10  ;;  %v332_v12 = vpop.f32.mrb[1].mxu0 }
  0xe7   : > { %252 = vst.msk [vmem:[%s165_s30] sm:$0xff] %vm178_vm1, %v249_v11 }
  0xe8 PF: > { %s13_s12 = sadd.s32 1, %s356_s12  }
  0xe9   : > { %p10_p4 = scmp.ge.s32.totalorder %s13_s12, 4  }
  0xeb   :  { %12 = sbr.rel (!%p10_p4) target bundleno = 1 (0x1), region = 62 }

// kernel: moe_block_forward.9
= control target key start
LH: loop header
LB: loop body
LE: loop exit
PB: predicated region body
PF: predicated region fallthrough
CT: control target
= control target key end

     0   :  { %s2067_s0 = inlined_call_operand.vmem [shape: s32[2,4], index: 0, kind: input, shape index: {}]   ;;  %s2068_s2 = inlined_call_operand.vmem [shape: f32[2,8,32], index: 2, kind: input, shape index: {}]   ;;  %s2069_s3 = inlined_call_operand.vmem [shape: f32[2,8,32], index: 3, kind: input, shape index: {}]   ;;  %s2070_s4 = inlined_call_operand.vmem [shape: f32[14,32,128], index: 4, kind: input, shape index: {}]   ;;  %s2071_s5 = inlined_call_operand.vmem [shape: f32[14,1,128], index: 5, kind: input, shape index: {}]   ;;  %s2072_s6 = inlined_call_operand.vmem [shape: f32[14,128,32], index: 6, kind: input, shape index: {}]   ;;  %s2073_s7 = inlined_call_operand.vmem [shape: f32[14,1,32], index: 7, kind: input, shape index: {}]   ;;  %s2074_s8 = inlined_call_operand.vmem [shape: f32[32,128], index: 8, kind: input, shape index: {}]   ;;  %s2075_s9 = inlined_call_operand.vmem [shape: f32[1,128], index: 9, kind: input, shape index: {}]   ;;  %s2076_s10 = inlined_call_operand.vmem [shape: f32[128,32], index: 10, kind: input, shape index: {}]   ;;  %s2077_s11 = inlined_call_operand.vmem [shape: f32[1,32], index: 11, kind: input, shape index: {}]   ;;  %s2078_s12 = inlined_call_operand.hbm [shape: f32[2,8,32], index: 12, kind: output, shape index: {}]   ;;  %s2079_s1 = inlined_call_operand.vmem [shape: f32[2,4], index: 1, kind: input, shape index: {}]  }
   0x1   :  { %2093 = sst [smem:[#allocation21_spill]] %s2068_s2  ;;  %s17_s23 = sshll.u32 %s2067_s0, 4  ;;  %s18_s23 = int_to_ptr.vmem [resolvable:$true] %s17_s23 }
   0x2   :  { %2094 = sst [smem:[#allocation22_spill]] %s2069_s3  ;;  %s21_s26 = sshll.u32 %s2079_s1, 4  ;;  %s22_s26 = int_to_ptr.vmem [resolvable:$true] %s21_s26 }
   0x3   :  { %2095 = sst [smem:[#allocation23_spill]] %s2078_s12  ;;  %s1586_s27 = scalar_lea.vmem %s18_s23, 32 }
   0x4   :  { %p1587_p0 = scmp.ne.s32.totalorder %s18_s23, %s1586_s27  ;;  %p1591_p1 = scmp.lt.s32.totalorder %s18_s23, %s18_s23 }
   0x5   :  { %p1592_p2 = scmp.lt.s32.totalorder %s1586_s27, %s1586_s27 }
   0x7   :  { %p1593_p3 = por %p1592_p2, %p1591_p1 }
   0x9   :  { %p1594_p4 = pnand %p1593_p3, %p1587_p0 }
   0xb   :  { %1597 = shalt.err (!%p1594_p4)  }
   0xc   :  { %s1708_s28 = smov [#allocation4]   ;;  %s1598_s29 = scalar_lea.vmem %s22_s26, 32 }
   0xd   :  { %20 = dma.vmem_to_smem %s18_s23, 32, %s1708_s28, [#allocation3] }
   0xe   :  { %p1599_p5 = scmp.ne.s32.totalorder %s22_s26, %s1598_s29  ;;  %p1603_p6 = scmp.lt.s32.totalorder %s22_s26, %s22_s26 }
   0xf   :  { %p1604_p7 = scmp.lt.s32.totalorder %s1598_s29, %s1598_s29 }
  0x11   :  { %p1605_p8 = por %p1604_p7, %p1603_p6 }
  0x13   :  { %p1606_p9 = pnand %p1605_p8, %p1599_p5 }
  0x15   :  { %1609 = shalt.err (!%p1606_p9)  }
  0x16   :  { %s1709_s0 = smov [#allocation5]  }
  0x17   :  { %24 = dma.vmem_to_smem %s22_s26, 32, %s1709_s0, [#allocation3] }
  0x18   :  { %1670 = dma.done.wait [#allocation3], 64 }
  0x19   :  { %1671 = vsyncadd [#allocation3], 4294967232 }
  0x1a   :  { %26 = sfence }
  0x1b   :  { %27 = vsyncpa [#allocation7], 0 }
  0x1c   :  { %29 = vsyncpa [#allocation7 + $0x1], 0  ;;  %s1789_s1 = smov 0   ;;  %s1791_s30 = smov 0  }
  0x1d   :  { %s1793_s13 = smov 0   ;;  %s1795_s14 = smov 0  }
  0x1e   :  { %s1797_s15 = smov 0   ;;  %s1799_s16 = smov 0  }
  0x1f   :  { %s1801_s17 = smov 0   ;;  %s1803_s18 = smov 0  }
  0x20 LB: > { %2096 = sst [smem:[#allocation10_spill]] %s1678_s1  ;;  %s1267_s19 = sadd.s32 4294967295, %s1706_s18   ;;  %s1706_s18 = sphi %s1803_s18, %s35_s18   ;;  %s1702_s17 = sphi %s1801_s17, %s2124_s17   ;;  %s1698_s16 = sphi %s1799_s16, %s2123_s16   ;;  %s1694_s15 = sphi %s1797_s15, %s2122_s15   ;;  %s1690_s14 = sphi %s1795_s14, %s2121_s14   ;;  %s1686_s13 = sphi %s1793_s13, %s2120_s13   ;;  %s1682_s30 = sphi %s1791_s30, %s2119_s30   ;;  %s1678_s1 = sphi %s1789_s1, %s2118_s1  }
  0x21   : > { %2097 = sst [smem:[#allocation11_spill]] %s1682_s30  ;;  %s1268_s20 = sadd.s32 4294967294, %s1706_s18  }
  0x22   : > { %2098 = sst [smem:[#allocation12_spill]] %s1686_s13  ;;  %s47_s21 = sadd.s32 1, %s1698_s16 }
  0x23   : > { %2099 = sst [smem:[#allocation13_spill]] %s1698_s16  ;;  %p48_p10 = scmp.ge.s32.totalorder %s47_s21, 4 }
  0x24   : > { %2100 = sst [smem:[#allocation14_spill]] %s1702_s17  ;;  %s54_s22 = sadd.s32 1, %s1702_s17 }
  0x25   : > { %2101 = sst [smem:[#allocation15_spill]] %s1706_s18  ;;  %p381_p11 = scmp.ne.s32.totalorder %s1686_s13, %s1682_s30 }
  0x26   : > { %p382_p12 = scmp.eq.s32.totalorder %s1267_s19, 7  ;;  %s2126_s21 = smov (%p48_p10, %s47_s21), 0 }
  0x27   : > { %2102 = sst [smem:[#allocation16_spill]] %s2126_s21  ;;  %s2128_s22 = smov (!%p48_p10, %s54_s22), %s1702_s17 }
  0x28   : > { %p1838_p13 = por %p382_p12, %p381_p11  ;;  %p387_p0 = scmp.ne.s32.totalorder %s1682_s30, %s1678_s1 }
  0x29   : > { %p56_p1 = scmp.ge.s32.totalorder %s2128_s22, 2  ;;  %p388_p2 = scmp.eq.s32.totalorder %s1268_s20, 7 }
  0x2a   : > { %s2103_s23 = scalar_select %p1838_p13, 1, 0 }
  0x2b   : > { %p1279_p3 = scmp.ge.s32.totalorder %s1706_s18, 1  ;;  %p530_p4 = scmp.lt.s32.totalorder %s1706_s18, 9 }
  0x2c   : > { %2104 = sst [smem:[#allocation17_spill]] %s2103_s23  ;;  %s2130_s22 = smov (%p56_p1, %s2128_s22), 0 }
  0x2d   : > { %2105 = sst [smem:[#allocation18_spill]] %s2130_s22  ;;  %p1848_p5 = por %p388_p2, %p387_p0 }
  0x2e   : > { %p531_p6 = pnand %p1279_p3, %p530_p4  ;;  %s366_s25 = ssub.s32 %s1702_s17, %s2130_s22 }
  0x2f   : > { %s2106_s24 = scalar_select %p1848_p5, 1, 0 }
  0x30   : > { %s371_s26 = sadd.s32 1, %s1686_s13  ;;  %p369_p7 = scmp.eq.s32.totalorder %s366_s25, 0 }
  0x31   : > { %2107 = sst [smem:[#allocation19_spill]] %s2106_s24  ;;  %534 = sbr.rel (%p531_p6) target bundleno = 779 (0x30b), region = 60 }
  0x32   : > { %s1856_s27 = scalar_select %p369_p7, %s1686_s13, %s371_s26  }
  0x33   : > { %s2084_s28 = sand.u32 (!%p531_p6), 1, %s1682_s30   ;;  %p625_p8 = scmp.lt.s32.totalorder (!%p531_p6), %s1694_s15, 1 }
  0x34   : > { %2108 = sst [smem:[#allocation20_spill]] %s1856_s27  ;;  %s1862_s29 = sshll.u32 (!%p531_p6), %s2084_s28, 3 }
  0x35   : > { %s639_s0 = sshra.s32 (!%p531_p6), %s1690_s14, 7  ;;  %s644_s25 = sand.u32 (!%p531_p6), 127, %s1690_s14 }
  0x36   : > { %s641_s19 = sadd.s32 (!%p531_p6), %s1694_s15, %s639_s0  ;;  %s2109_s2 = sld [smem:[#allocation21_spill]] (!%p531_p6) }
  0x37   : > { %s1283_s22 = sshll.u32 (!%p531_p6), %s641_s19, 7  ;;  %s2110_s3 = sld [smem:[#allocation22_spill]] (!%p531_p6) }
  0x38   : > { %s626_s20 = scalar_select %p625_p8, %s1694_s15, 1 }
  0x39   : > { %s1868_s21 = sadd.s32 %s1283_s22, %s644_s25  ;;  %s624_s17 = scalar_lea.vmem [#allocation6], %s1862_s29 }
  0x3a   : > { %s1281_s26 = sshll.u32 %s626_s20, 3  ;;  %s646_s0 = sld [smem:[#allocation4 + %s1868_s21]] }
  0x3b   : > { %s667_s19 = sld [smem:[#allocation4 + %s1868_s21]]  ;;  %p1291_p0 = scmp.ne.s32.totalorder %s1690_s14, 0 }
  0x3c   : > { %s1873_s27 = scalar_lea.vmem %s2109_s2, %s1281_s26  ;;  %s686_s1 = sld [smem:[#allocation4 + %s1868_s21]]  ;;  %vm723_vm0 = vcmask (!%p1291_p0), 261120   ;;  %v1710_v0 = vmov (!%p1291_p0), 0.0  }
  0x3d   : > { %s1878_s24 = scalar_lea.vmem %s2110_s3, %s1281_s26  ;;  %s707_s22 = sld [smem:[#allocation4 + %s1868_s21]]  ;;  %724 = vst.msk [vmem:[#allocation2] sm:$0xff] (!%p1291_p0), %vm723_vm0, %v1710_v0 }
  0x40   : > { %p647_p9 = scmp.lt.s32.totalorder %s646_s0, 13 }
  0x41   : > { %p668_p10 = scmp.lt.s32.totalorder %s667_s19, 13  ;;  %722 = sbr.rel (%p1291_p0) target bundleno = 72 (0x48), region = 64 }
  0x42   : > { %p687_p11 = scmp.lt.s32.totalorder %s686_s1, 13  ;;  %s2132_s0 = smov (!%p647_p9, %s646_s0), 13 }
  0x43   : > { %p708_p12 = scmp.lt.s32.totalorder %s707_s22, 13  ;;  %s2134_s19 = smov (!%p668_p10, %s667_s19), 13 }
  0x44   : > { %s1304_s16 = sshll.u32 %s2132_s0, 5  ;;  %s670_s26 = scalar_lea.vmem %s2071_s5, %s2134_s19 }
  0x45   : > { %s651_s13 = scalar_lea.vmem %s2070_s4, %s1304_s16  ;;  %s2136_s1 = smov (!%p687_p11, %s686_s1), 13 }
  0x46   : > { %s2138_s22 = smov (!%p708_p12, %s707_s22), 13  ;;  %s1305_s2 = sshll.u32 %s2136_s1, 7 }
  0x47   : > { %s1898_s12 = scalar_lea.vmem %s2072_s6, %s1305_s2  ;;  %s710_s30 = scalar_lea.vmem %s2073_s7, %s2138_s22 }
  0x48 PF: > { %v734_v1 = vld [vmem:[%s651_s13] sm:$0xff]  ;;  %v735_v2 = vld [vmem:[%s651_s13 + $0x8] sm:$0xff]  ;;  %v736_v3 = vld [vmem:[%s651_s13 + $0x10] sm:$0xff]  ;;  %v1711_v4 = vmov 0.0|0.0   ;;  %vm1712_vm1 = vmmov 0   ;;  %v1713_v7 = vmov 0.0  }
  0x49   : > { %1442 = vmatprep.subr.bf16.mxu0 %v1711_v4  ;;  %v1443_v5 = vpack.c.bf16 %v735_v2, %v734_v1  ;;  %v737_v6 = vld [vmem:[%s651_s13 + $0x18] sm:$0xff]  ;;  %1358 = vmatprep.mubr.msk.f32.mxu0 %vm1712_vm1, %v1713_v7  ;;  %v828_v8 = vld [vmem:[%s1898_s12] sm:$0xff]  ;;  %v829_v9 = vld [vmem:[%s1898_s12 + $0x8] sm:$0xff]  ;;  %vm745_vm2 = vcmask 261120   ;;  %p1296_p1 = scmp.ne.s32.totalorder %s1690_s14, 3 }
  0x4a   : > { %1448 = vmatprep.subr.bf16.mxu1 %v1711_v4  ;;  %1393 = vmatprep.mubr.msk.f32.mxu1 %vm1712_vm1, %v1713_v7  ;;  %v1446_v10 = vpack.c.bf16 %v737_v6, %v736_v3  ;;  %v1449_v11 = vpack.c.bf16 %v829_v9, %v828_v8  ;;  %v1909_v12 = vld [vmem:[%s1873_s27] sm:$0xff]  ;;  %v830_v13 = vld [vmem:[%s1898_s12 + $0x10] sm:$0xff]  ;;  %v831_v14 = vld [vmem:[%s1898_s12 + $0x18] sm:$0xff]  ;;  %v1714_v58 = vmov (!%p1296_p1), 0.0|0.0   ;;  %vm1715_vm3 = vmmov (!%p1296_p1), 0  }
  0x4b   : > { %1444 = vmatpush3.bf16.msra.mxu0 %v1443_v5  ;;  %v1452_v15 = vpack.c.bf16 %v831_v14, %v830_v13  ;;  %v832_v16 = vld [vmem:[%s1898_s12 + $0x20] sm:$0xff]  ;;  %v833_v17 = vld [vmem:[%s1898_s12 + $0x28] sm:$0xff]  ;;  %v834_v19 = vld [vmem:[%s1898_s12 + $0x30] sm:$0xff]  ;;  %v1716_v61 = vmov (!%p1296_p1), 0.0  }
  0x4c   : > { %1445 = vmatprep.subr.bf16.mxu0 %v1711_v4  ;;  %1450 = vmatpush3.bf16.msra.mxu1 %v1449_v11  ;;  %v1455_v18 = vpack.c.bf16 %v833_v17, %v832_v16  ;;  %v835_v20 = vld [vmem:[%s1898_s12 + $0x38] sm:$0xff]  ;;  %v836_v22 = vld [vmem:[%s1898_s12 + $0x40] sm:$0xff]  ;;  %v837_v23 = vld [vmem:[%s1898_s12 + $0x48] sm:$0xff] }
  0x4d   : > { %1451 = vmatprep.subr.bf16.mxu1 %v1711_v4  ;;  %v1458_v21 = vpack.c.bf16 %v835_v20, %v834_v19  ;;  %v1461_v24 = vpack.c.bf16 %v837_v23, %v836_v22  ;;  %v838_v25 = vld [vmem:[%s1898_s12 + $0x50] sm:$0xff]  ;;  %v839_v26 = vld [vmem:[%s1898_s12 + $0x58] sm:$0xff]  ;;  %v840_v28 = vld [vmem:[%s1898_s12 + $0x60] sm:$0xff] }
  0x4e   : > { %v1464_v27 = vpack.c.bf16 %v839_v26, %v838_v25  ;;  %v841_v29 = vld [vmem:[%s1898_s12 + $0x68] sm:$0xff]  ;;  %v842_v31 = vld [vmem:[%s1898_s12 + $0x70] sm:$0xff]  ;;  %v843_v32 = vld [vmem:[%s1898_s12 + $0x78] sm:$0xff]  ;;  %s733_s12 = sld [smem:[#allocation5 + %s1868_s21]] }
  0x4f   : > { %1447 = vmatpush3.bf16.msra.mxu0 %v1446_v10  ;;  %v1467_v30 = vpack.c.bf16 %v841_v29, %v840_v28  ;;  %v1470_v33 = vpack.c.bf16 %v843_v32, %v842_v31  ;;  %v1293_v34 = vld [vmem:[%s670_s26] ss:$0 sm:$0xff]  ;;  %v931_v56 = vld [vmem:[%s2074_s8 + $0x8] sm:$0xff] (!%p1296_p1)  ;;  %v932_v57 = vld [vmem:[%s2074_s8 + $0x10] sm:$0xff] (!%p1296_p1) }
  0x50   : > { %1453 = vmatpush3.bf16.msra.mxu1 %v1452_v15  ;;  %v1295_v47 = vld [vmem:[%s710_s30] ss:$0 sm:$0xff]  ;;  %1472 = vmatprep.subr.bf16.mxu0 (!%p1296_p1), %v1714_v58  ;;  %v933_v60 = vld [vmem:[%s2074_s8 + $0x18] sm:$0xff] (!%p1296_p1)  ;;  %v1021_v63 = vld [vmem:[%s2076_s10 + $0x8] sm:$0xff] (!%p1296_p1) }
  0x51   : > { %1454 = vmatprep.subr.bf16.mxu1 %v1711_v4  ;;  %v921_v52 = vld [vmem:[#allocation2] sm:$0xff]  ;;  %v1476_v1 = vpack.c.bf16 (!%p1296_p1), %v933_v60, %v932_v57  ;;  %v1022_v2 = vld [vmem:[%s2076_s10 + $0x10] sm:$0xff] (!%p1296_p1)  ;;  %v1023_v3 = vld [vmem:[%s2076_s10 + $0x18] sm:$0xff] (!%p1296_p1) }
  0x52   : > { %1359 = vmatmul.mubr.msk.f32.vlgmr.msra.gmra.mrb[0].mxu0 %vm745_vm2, %v1909_v12  ;;  %v930_v55 = vld [vmem:[%s2074_s8] sm:$0xff] (!%p1296_p1)  ;;  %v1025_v6 = vld [vmem:[%s2076_s10 + $0x28] sm:$0xff] (!%p1296_p1)  ;;  %v1026_v8 = vld [vmem:[%s2076_s10 + $0x30] sm:$0xff] (!%p1296_p1) }
  0x53   : > { %v1473_v59 = vpack.c.bf16 (!%p1296_p1), %v931_v56, %v930_v55  ;;  %1404 = vmatprep.mubr.msk.f32.mxu0 (!%p1296_p1), %vm1715_vm3, %v1716_v61  ;;  %v1020_v62 = vld [vmem:[%s2076_s10] sm:$0xff] (!%p1296_p1)  ;;  %v1027_v9 = vld [vmem:[%s2076_s10 + $0x38] sm:$0xff] (!%p1296_p1)  ;;  %v1030_v14 = vld [vmem:[%s2076_s10 + $0x50] sm:$0xff] (!%p1296_p1) }
  0x54   : > { %1456 = vmatpush3.bf16.msra.mxu1 %v1455_v18  ;;  %v922_v49 = vstv %s733_s12  ;;  %v1479_v0 = vpack.c.bf16 (!%p1296_p1), %v1021_v63, %v1020_v62  ;;  %v1024_v5 = vld [vmem:[%s2076_s10 + $0x20] sm:$0xff] (!%p1296_p1)  ;;  %v1488_v10 = vpack.c.bf16 (!%p1296_p1), %v1027_v9, %v1026_v8  ;;  %v1031_v15 = vld [vmem:[%s2076_s10 + $0x58] sm:$0xff] (!%p1296_p1)  ;;  %v1033_v18 = vld [vmem:[%s2076_s10 + $0x68] sm:$0xff] (!%p1296_p1) }
  0x55   : > { %1457 = vmatprep.subr.bf16.mxu1 %v1711_v4  ;;  %1474 = vmatpush3.bf16.msra.mxu0 (!%p1296_p1), %v1473_v59  ;;  %v1485_v7 = vpack.c.bf16 (!%p1296_p1), %v1025_v6, %v1024_v5  ;;  %v1028_v11 = vld [vmem:[%s2076_s10 + $0x40] sm:$0xff] (!%p1296_p1)  ;;  %v1494_v16 = vpack.c.bf16 (!%p1296_p1), %v1031_v15, %v1030_v14  ;;  %v1034_v20 = vld [vmem:[%s2076_s10 + $0x70] sm:$0xff] (!%p1296_p1) }
  0x56   : > { %1475 = vmatprep.subr.bf16.mxu0 (!%p1296_p1), %v1714_v58  ;;  %v1032_v17 = vld [vmem:[%s2076_s10 + $0x60] sm:$0xff] (!%p1296_p1) }
  0x57   : > { %v1497_v19 = vpack.c.bf16 (!%p1296_p1), %v1033_v18, %v1032_v17  ;;  %v1297_v23 = vld [vmem:[%s2075_s9] ss:$0 sm:$0xff] (!%p1296_p1) }
  0x58   : > { %1459 = vmatpush3.bf16.msra.mxu1 %v1458_v21  ;;  %v1035_v21 = vld [vmem:[%s2076_s10 + $0x78] sm:$0xff] (!%p1296_p1) }
  0x59   : > { %1460 = vmatprep.subr.bf16.mxu1 %v1711_v4  ;;  %1477 = vmatpush3.bf16.msra.mxu0 (!%p1296_p1), %v1476_v1  ;;  %v1500_v22 = vpack.c.bf16 (!%p1296_p1), %v1035_v21, %v1034_v20 }
  0x5c   : > { %1462 = vmatpush3.bf16.msra.mxu1 %v1461_v24 }
  0x5d   : > { %1463 = vmatprep.subr.bf16.mxu1 %v1711_v4 }
  0x60   : > { %1465 = vmatpush3.bf16.msra.mxu1 %v1464_v27 }
  0x61   : > { %1466 = vmatprep.subr.bf16.mxu1 %v1711_v4 }
  0x64   : > { %1468 = vmatpush3.bf16.msra.mxu1 %v1467_v30 }
  0x65   : > { %1469 = vmatprep.subr.bf16.mxu1 %v1711_v4  ;;  %v1482_v4 = vpack.c.bf16 (!%p1296_p1), %v1023_v3, %v1022_v2 }
  0x68   : > { %1471 = vmatpush3.bf16.msra.mxu1 %v1470_v33 }
  0x69   : > { %1478 = vmatprep.subr.bf16.mxu1 (!%p1296_p1), %v1714_v58 }
 0x125   : > { %v815_v35 = vpop.f32.mrb[0].mxu0 }
 0x126   : > { %v816_v36 = vadd.f32 %v1293_v34, %v815_v35  ;;  %v1360_v37 = vpop.f32.mrb[1].mxu0  ;;  %1405 = vmatmul.mubr.msk.f32.vlgmr.msra.gmra.mrb[0].mxu0 (!%p1296_p1), %vm745_vm2, %v1909_v12  ;;  %v1029_v12 = vld [vmem:[%s2076_s10 + $0x48] sm:$0xff] (!%p1296_p1) }
 0x127   : > { %v1491_v13 = vpack.c.bf16 (!%p1296_p1), %v1029_v12, %v1028_v11 }
 0x128   : > { %v819_v38 = vmul.f32 %v816_v36, %v816_v36 }
 0x12a   : > { %v820_v39 = vmul.f32 %v819_v38, %v816_v36 }
 0x12c   : > { %v821_v40 = vmul.f32 0.044715, %v820_v39 }
 0x12e   : > { %v822_v41 = vadd.f32 %v821_v40, %v816_v36 }
 0x130   : > { %v823_v42 = vmul.f32 0.7978846, %v822_v41  ;;  %v1115_v41 = vld [vmem:[%s1878_s24] sm:$0xff] (!%p1296_p1) }
 0x132   : > { %1582 = vtanh.f32 %v823_v42 }
 0x13c   : > { %v1583_v43 = vpop.eup %1582 }
 0x13d   : > { %v825_v44 = vadd.f32 1.0, %v1583_v43 }
 0x13f   : > { %v826_v45 = vmul.f32 0.5, %v825_v44 }
 0x141   : > { %v827_v46 = vmul.f32 %v826_v45, %v816_v36  ;;  %v1299_v36 = vld [vmem:[%s2077_s11] ss:$0 sm:$0xff] (!%p1296_p1) }
 0x143   : > { %1394 = vmatmul.mubr.f32.vlgmr.msra.gmra.mrb[0].mxu1 %v827_v46 }
 0x144   : > { %1439 = vmatprep.mubr.msk.f32.mxu1 (!%p1296_p1), %vm1715_vm3, %v1716_v61  ;;  %1480 = vmatpush3.bf16.msra.mxu1 (!%p1296_p1), %v1479_v0 }
 0x145   : > { %1481 = vmatprep.subr.bf16.mxu1 (!%p1296_p1), %v1714_v58 }
 0x148   : > { %1483 = vmatpush3.bf16.msra.mxu1 (!%p1296_p1), %v1482_v4 }
 0x149   : > { %1484 = vmatprep.subr.bf16.mxu1 (!%p1296_p1), %v1714_v58 }
 0x14c   : > { %1486 = vmatpush3.bf16.msra.mxu1 (!%p1296_p1), %v1485_v7 }
 0x14d   : > { %1487 = vmatprep.subr.bf16.mxu1 (!%p1296_p1), %v1714_v58 }
 0x150   : > { %1489 = vmatpush3.bf16.msra.mxu1 (!%p1296_p1), %v1488_v10 }
 0x151   : > { %1490 = vmatprep.subr.bf16.mxu1 (!%p1296_p1), %v1714_v58 }
 0x154   : > { %1492 = vmatpush3.bf16.msra.mxu1 (!%p1296_p1), %v1491_v13 }
 0x155   : > { %1493 = vmatprep.subr.bf16.mxu1 (!%p1296_p1), %v1714_v58 }
 0x158   : > { %1495 = vmatpush3.bf16.msra.mxu1 (!%p1296_p1), %v1494_v16 }
 0x159   : > { %1496 = vmatprep.subr.bf16.mxu1 (!%p1296_p1), %v1714_v58 }
 0x15c   : > { %1498 = vmatpush3.bf16.msra.mxu1 (!%p1296_p1), %v1497_v19 }
 0x15d   : > { %1499 = vmatprep.subr.bf16.mxu1 (!%p1296_p1), %v1714_v58 }
 0x160   : > { %1501 = vmatpush3.bf16.msra.mxu1 (!%p1296_p1), %v1500_v22 }
 0x1f9   : > { %v1007_v24 = vpop.f32.mrb[0].mxu0 (!%p1296_p1) }
 0x1fa   : > { %v1008_v25 = vadd.f32 (!%p1296_p1), %v1297_v23, %v1007_v24  ;;  %v1406_v26 = vpop.f32.mrb[1].mxu0 (!%p1296_p1) }
 0x1fc   : > { %v1011_v27 = vmul.f32 (!%p1296_p1), %v1008_v25, %v1008_v25 }
 0x1fe   : > { %v1012_v28 = vmul.f32 (!%p1296_p1), %v1011_v27, %v1008_v25 }
 0x200   : > { %v1013_v29 = vmul.f32 (!%p1296_p1), 0.044715, %v1012_v28 }
 0x202   : > { %v1014_v30 = vadd.f32 (!%p1296_p1), %v1013_v29, %v1008_v25 }
 0x204   : > { %v1015_v31 = vmul.f32 (!%p1296_p1), 0.7978846, %v1014_v30 }
 0x206   : > { %1584 = vtanh.f32 (!%p1296_p1), %v1015_v31 }
 0x210   : > { %v1585_v32 = vpop.eup (!%p1296_p1), %1584 }
 0x211   : > { %v1017_v33 = vadd.f32 (!%p1296_p1), 1.0, %v1585_v32 }
 0x213   : > { %v1018_v34 = vmul.f32 (!%p1296_p1), 0.5, %v1017_v33 }
 0x215   : > { %v1019_v35 = vmul.f32 (!%p1296_p1), %v1018_v34, %v1008_v25 }
 0x216   : > { %v917_v48 = vpop.f32.mrb[0].mxu1 }
 0x217   : > { %v918_v50 = vadd.f32 %v1295_v47, %v917_v48  ;;  %v1395_v51 = vpop.f32.mrb[1].mxu1  ;;  %929 = sbr.rel (%p1296_p1) target bundleno = 754 (0x2f2), region = 68  ;;  %1440 = vmatmul.mubr.f32.vlgmr.msra.gmra.mrb[0].mxu1 (!%p1296_p1), %v1019_v35 }
 0x219   : > { %v923_v53 = vmul.f32 %v922_v49, %v918_v50 }
 0x21b   : > { %v924_v54 = vadd.f32 %v923_v53, %v921_v52 }
 0x21d   : > { %925 = vst.msk [vmem:[#allocation2] sm:$0xff] %vm745_vm2, %v924_v54 }
 0x224   : > { %v1113_v38 = vld [vmem:[#allocation2] sm:$0xff] }
 0x2ea   : > { %v1109_v37 = vpop.f32.mrb[0].mxu1 }
 0x2eb   : > { %v1110_v39 = vadd.f32 %v1299_v36, %v1109_v37  ;;  %v1441_v40 = vpop.f32.mrb[1].mxu1 }
 0x2ed   : > { %v1114_v42 = vadd.f32 %v1113_v38, %v1110_v39 }
 0x2ef   : > { %v1116_v43 = vadd.f32 %v1115_v41, %v1114_v42 }
 0x2f1   : > { %1117 = vst.msk [vmem:[%s624_s17] sm:$0xff] %vm745_vm2, %v1116_v43 }
 0x2f2 PF: > { %s2111_s16 = sld [smem:[#allocation11_spill]]  ;;  %s1301_s14 = sshll.u32 %s1694_s15, 7 }
 0x2f3   : > { %s2113_s25 = sld [smem:[#allocation23_spill]]  ;;  %s1133_s0 = sshll.u32 %s624_s17, 4  ;;  %s1134_s0 = int_to_ptr.vmem [resolvable:$true] %s1133_s0 }
 0x2f4   : > { %s1610_s3 = scalar_lea.vmem %s1134_s0, 128  ;;  %s1717_s12 = smov [#allocation6]  }
 0x2f5   : > { %p1611_p2 = scmp.ne.s32.totalorder %s1134_s0, %s1610_s3  ;;  %s1614_s1 = sshll.u32 %s1717_s12, 4  ;;  %s1615_s1 = int_to_ptr.vmem [resolvable:$false] %s1614_s1 }
 0x2f6   : > { %s1616_s18 = scalar_lea.vmem %s1615_s1, 256  ;;  %p1617_p6 = scmp.lt.s32.totalorder %s1134_s0, %s1615_s1 }
 0x2f7   : > { %p1612_p3 = pnand %p1611_p2, %p1838_p13  ;;  %p1618_p7 = scmp.lt.s32.totalorder %s1616_s18, %s1610_s3 }
 0x2f8   : > { %s2114_s24 = sand.u32 1, %s2111_s16  }
 0x2f9   : > { %s2016_s26 = scalar_lea.hbm %s2113_s25, %s1301_s14  ;;  %s1119_s2 = scalar_lea.sflag [#allocation7], %s2114_s24 }
 0x2fa   : > { %p1613_p4 = pneg %p1612_p3  ;;  %p1619_p8 = por %p1618_p7, %p1617_p6 }
 0x2fc   : > { %p1620_p9 = pnand %p1619_p8, %p1613_p4 }
 0x2fe   : > { %1623 = shalt.err (!%p1620_p9)
}
 0x2ff   : > { %s1624_s15 = scalar_lea.hbm %s2016_s26, 128  ;;  %s1628_s23 = scalar_lea.hbm %s2113_s25, 256 }
 0x300   : > { %p1625_p10 = scmp.ne.s32.totalorder %s2016_s26, %s1624_s15  ;;  %p1629_p0 = scmp.lt.u32.totalorder %s2016_s26, %s2113_s25 }
 0x301   : > { %p1630_p1 = scmp.lt.u32.totalorder %s1628_s23, %s1624_s15  ;;  %p1632_p3 = scmp.lt.u32.totalorder %s1624_s15, %s2016_s26 }
 0x302   : > { %p1626_p11 = pnand %p1625_p10, %p1838_p13 }
 0x303   : > { %p1631_p2 = por %p1630_p1, %p1629_p0 }
 0x304   : > { %p1627_p12 = pneg %p1626_p11 }
 0x305   : > { %p1633_p4 = por %p1632_p3, %p1631_p2 }
 0x307   : > { %p1634_p6 = pnand %p1633_p4, %p1627_p12 }
 0x309   : > { %1637 = shalt.err (!%p1634_p6)
}
 0x30a   : > { %1502 = dma.vmem_to_hbm [thread:$0]  (%p1838_p13), %s1134_s0, 128, %s2016_s26, %s1119_s2  }
 0x30b PF: > { %s2115_s19 = sld [smem:[#allocation15_spill]]  ;;  %s2116_s30 = sld [smem:[#allocation10_spill]] }
 0x311   : > { %p1508_p7 = scmp.ge.s32.totalorder %s2115_s19, 2  ;;  %s1145_s16 = sand.u32 1, %s2116_s30  }
 0x312   : > { %s1146_s14 = scalar_lea.sflag [#allocation7], %s1145_s16 }
 0x313   : > { %p1505_p8 = pnand %p1508_p7, %p1848_p5 }
 0x315   : > { %1673 = dma.done.wait (!%p1505_p8), %s1146_s14, 128  }
 0x316   : > { %1675 = vsyncadd (!%p1505_p8), %s1146_s14, 4294967168  ;;  %s35_s18 = sadd.s32 1, %s2115_s19   ;;  %s2118_s1 = sld [smem:[#allocation11_spill]] }
 0x317   : > { %p32_p9 = scmp.ge.s32.totalorder %s35_s18, 10   ;;  %s2119_s30 = sld [smem:[#allocation12_spill]] }
 0x318   : > { %s2120_s13 = sld [smem:[#allocation20_spill]]  ;;  %s2121_s14 = sld [smem:[#allocation13_spill]] }
 0x319   : > { %s2122_s15 = sld [smem:[#allocation14_spill]]  ;;  %s2123_s16 = sld [smem:[#allocation16_spill]] }
 0x31a   : > { %s2124_s17 = sld [smem:[#allocation18_spill]]  ;;  %34 = sbr.rel (!%p32_p9) target bundleno = 32 (0x20), region = 118 }
 0x321   :  { %1151 = vsyncpa [#allocation7], 1 }
 0x322   :  { %1153 = vsyncpa [#allocation7 + $0x1], 1 }

</bundles_post_ra>
